<compile_context>
chip_gen: v5e
topology: v5e:2x2
jax: 0.10.0
libtpu: 0.0.40
codegen_flags: <defaults>
</compile_context>

<pallas_src>
import functools

import jax
import jax.numpy as jnp
from jax.experimental import pallas as pl
from jax.experimental.pallas import tpu as pltpu


PATCH = 8          # downsampling factor of the context/feature encoders (1/8 res)
LANE = 128         # TPU lane width; all hidden dims padded/sized to this
VMEM_LIMIT = 48 * 1024 * 1024   # safe on v7x (64 MiB physical) and 128 MiB parts
TN_COST = 512      # cost-volume target-axis tile (clamped to N at small sizes)
TQ_ATTN = 128      # flash-attention query tile
TK_ATTN = 128      # flash-attention key/value tile


def _cp(dims):
    return pltpu.CompilerParams(dimension_semantics=dims,
                                vmem_limit_bytes=VMEM_LIMIT)


# ----------------------------- Pallas kernels -------------------------------

def _linear_kernel(x_ref, w_ref, b_ref, o_ref):
    # x: (1, N, Din) f32, w: (Din, Dout) bf16, b: (1, Dout) f32 -> o: (1, N, Dout) f32
    x = x_ref[0].astype(jnp.bfloat16)
    y = jnp.dot(x, w_ref[...], preferred_element_type=jnp.float32)
    o_ref[0] = y + b_ref[...]


def _cost_volume_kernel(f1_ref, f2_ref, o_ref):
    # f1: (1, N, D), f2: (1, tn, D) -> o: (1, N, tn); cost[i, j] = <f1_i, f2_j>/sqrt(D)
    d = f1_ref.shape[-1]
    a = f1_ref[0].astype(jnp.bfloat16)
    b = f2_ref[0].astype(jnp.bfloat16)
    c = jnp.dot(a, b.T, preferred_element_type=jnp.float32)
    o_ref[0] = c * (1.0 / jnp.sqrt(jnp.float32(d)))


def _cost_tokens_kernel(f1_ref, f2_ref, wproj_ref, b_ref, o_ref):
    # Re-associated cost tokenization: (f1 f2^T / sqrt(D)) Wproj + b
    #   = f1 @ (f2^T Wproj) / sqrt(D) + b        (never materializes NxN)
    d = f1_ref.shape[-1]
    f2 = f2_ref[0].astype(jnp.bfloat16)                    # (N, D)
    t = jnp.dot(f2.T, wproj_ref[...],                      # (D, Dm) f32
                preferred_element_type=jnp.float32)
    f1 = f1_ref[0].astype(jnp.bfloat16)                    # (N, D)
    tok = jnp.dot(f1, t.astype(jnp.bfloat16),              # (N, Dm) f32
                  preferred_element_type=jnp.float32)
    o_ref[0] = tok * (1.0 / jnp.sqrt(jnp.float32(d))) + b_ref[...]


def _flash_attn_kernel(xq_ref, xkv_ref, wq_ref, wkv_ref, wo_ref, o_ref,
                       q_sc, m_sc, l_sc, acc_sc):
    # Single-head cross-attention with residual, flash-style over Nk tiles.
    # xq: (1, tq, Dq), xkv: (1, tk, Dk), wq: (Dq, Dh) bf16, wkv: (Dk, 2*Dh) bf16,
    # wo: (Dh, Dq) bf16 -> o: (1, tq, Dq) f32.  Softmax stats stay in f32.
    kv = pl.program_id(2)
    dh = wq_ref.shape[1]

    @pl.when(kv == 0)
    def _():
        q = jnp.dot(xq_ref[0].astype(jnp.bfloat16), wq_ref[...],
                    preferred_element_type=jnp.float32)
        q_sc[...] = (q * (1.0 / jnp.sqrt(jnp.float32(dh)))).astype(jnp.bfloat16)
        m_sc[...] = jnp.full_like(m_sc, -jnp.inf)
        l_sc[...] = jnp.zeros_like(l_sc)
        acc_sc[...] = jnp.zeros_like(acc_sc)

    # fused K/V projection (one lane-dense matmul instead of two 128-wide ones)
    kvp = jnp.dot(xkv_ref[0].astype(jnp.bfloat16), wkv_ref[...],
                  preferred_element_type=jnp.float32)       # (tk, 2*Dh)
    k = kvp[:, :dh].astype(jnp.bfloat16)
    v = kvp[:, dh:].astype(jnp.bfloat16)

    s = jnp.dot(q_sc[...], k.T, preferred_element_type=jnp.float32)   # (tq, tk)
    m_new = jnp.maximum(m_sc[...], s.max(axis=-1, keepdims=True))
    alpha = jnp.exp(m_sc[...] - m_new)
    p = jnp.exp(s - m_new)
    l_sc[...] = alpha * l_sc[...] + p.sum(axis=-1, keepdims=True)
    acc_sc[...] = alpha * acc_sc[...] + jnp.dot(
        p.astype(jnp.bfloat16), v, preferred_element_type=jnp.float32)
    m_sc[...] = m_new

    @pl.when(kv == pl.num_programs(2) - 1)
    def _():
        inv_l = pl.reciprocal(l_sc[...], approx=True)
        attn = (acc_sc[...] * inv_l).astype(jnp.bfloat16)
        o_ref[0] = xq_ref[0] + jnp.dot(attn, wo_ref[...],
                                       preferred_element_type=jnp.float32)


# --------------------------- pallas_call wrappers ----------------------------

def pallas_linear(x, w, b):
    # x: [B, N, Din] f32, w: [Din, Dout] bf16, b: [1, Dout] f32
    B, N, Din = x.shape
    Dout = w.shape[1]
    return pl.pallas_call(
        _linear_kernel,
        out_shape=jax.ShapeDtypeStruct((B, N, Dout), jnp.float32),
        grid=(B,),
        in_specs=[
            pl.BlockSpec((1, N, Din), lambda i: (i, 0, 0)),
            pl.BlockSpec((Din, Dout), lambda i: (0, 0)),
            pl.BlockSpec((1, Dout), lambda i: (0, 0)),
        ],
        out_specs=pl.BlockSpec((1, N, Dout), lambda i: (i, 0, 0)),
        compiler_params=_cp(("parallel",)),
    )(x, w, b)


def pallas_cost_volume(f1, f2):
    # f1, f2: [B, N, D] f32 -> cost_maps: [B, N, N] f32, tiled along the target axis
    B, N, D = f1.shape
    tn = min(TN_COST, N)
    grid = (B, pl.cdiv(N, tn))
    return pl.pallas_call(
        _cost_volume_kernel,
        out_shape=jax.ShapeDtypeStruct((B, N, N), jnp.float32),
        grid=grid,
        in_specs=[
            pl.BlockSpec((1, N, D), lambda b, j: (b, 0, 0)),
            pl.BlockSpec((1, tn, D), lambda b, j: (b, j, 0)),
        ],
        out_specs=pl.BlockSpec((1, N, tn), lambda b, j: (b, 0, j)),
        compiler_params=_cp(("parallel", "parallel")),
    )(f1, f2)


def pallas_cost_tokens(f1, f2, wproj, bproj):
    # f1, f2: [B, N, D] f32, wproj: [N, Dm] bf16 -> tokens: [B, N, Dm] f32
    B, N, D = f1.shape
    Dm = wproj.shape[1]
    return pl.pallas_call(
        _cost_tokens_kernel,
        out_shape=jax.ShapeDtypeStruct((B, N, Dm), jnp.float32),
        grid=(B,),
        in_specs=[
            pl.BlockSpec((1, N, D), lambda i: (i, 0, 0)),
            pl.BlockSpec((1, N, D), lambda i: (i, 0, 0)),
            pl.BlockSpec((N, Dm), lambda i: (0, 0)),
            pl.BlockSpec((1, Dm), lambda i: (0, 0)),
        ],
        out_specs=pl.BlockSpec((1, N, Dm), lambda i: (i, 0, 0)),
        compiler_params=_cp(("parallel",)),
    )(f1, f2, wproj, bproj)


def pallas_attention(xq, xkv, wq, wkv, wo):
    # xq: [B, Nq, Dq] f32, xkv: [B, Nk, Dk] f32 -> [B, Nq, Dq] f32 (with residual)
    B, Nq, Dq = xq.shape
    _, Nk, Dk = xkv.shape
    Dh = wq.shape[1]
    tq = min(TQ_ATTN, Nq)
    tk = min(TK_ATTN, Nk)
    grid = (B, pl.cdiv(Nq, tq), pl.cdiv(Nk, tk))
    return pl.pallas_call(
        _flash_attn_kernel,
        out_shape=jax.ShapeDtypeStruct((B, Nq, Dq), jnp.float32),
        grid=grid,
        in_specs=[
            pl.BlockSpec((1, tq, Dq), lambda b, qi, ki: (b, qi, 0)),
            pl.BlockSpec((1, tk, Dk), lambda b, qi, ki: (b, ki, 0)),
            pl.BlockSpec((Dq, Dh), lambda b, qi, ki: (0, 0)),
            pl.BlockSpec((Dk, 2 * Dh), lambda b, qi, ki: (0, 0)),
            pl.BlockSpec((Dh, Dq), lambda b, qi, ki: (0, 0)),
        ],
        out_specs=pl.BlockSpec((1, tq, Dq), lambda b, qi, ki: (b, qi, 0)),
        scratch_shapes=[
            pltpu.VMEM((tq, Dh), jnp.bfloat16),   # pre-scaled Q (reused across Nk)
            pltpu.VMEM((tq, 1), jnp.float32),     # m (running max)
            pltpu.VMEM((tq, 1), jnp.float32),     # l (running denom)
            pltpu.VMEM((tq, Dh), jnp.float32),    # acc
        ],
        compiler_params=_cp(("parallel", "parallel", "arbitrary")),
    )(xq, xkv, wq, wkv, wo)


# ------------------------------- model glue ----------------------------------

def _extract_patches(img_nchw):
    # NCHW -> space-to-depth with stride PATCH: [B, N, PATCH*PATCH*C]
    B, C, H, W = img_nchw.shape
    x = jnp.transpose(img_nchw, (0, 2, 3, 1))
    x = x.reshape(B, H // PATCH, PATCH, W // PATCH, PATCH, C)
    x = jnp.transpose(x, (0, 1, 3, 2, 4, 5))
    return x.reshape(B, (H // PATCH) * (W // PATCH), PATCH * PATCH * C)


def _prepare_params(raw):
    """Fold 2*x-1 into the embed weights, fuse/pad, and cast weights to bf16."""
    def fold_norm(w, b):
        # (2x - 1) W + b = x (2W) + (b - 1^T W)
        return 2.0 * w, b - jnp.sum(w, axis=0, keepdims=True)

    p = {}
    w, b = fold_norm(raw["ctx_embed_w"], raw["ctx_embed_b"])
    p["ctx_embed_w"], p["ctx_embed_b"] = w.astype(jnp.bfloat16), b
    w, b = fold_norm(raw["feat_w"], raw["feat_b"])
    p["feat_w"], p["feat_b"] = w.astype(jnp.bfloat16), b

    for name in ("ctx_wq", "ctx_wkv", "ctx_wo",
                 "cost_proj_w",
                 "enc_wq", "enc_wkv", "enc_wo",
                 "enc2_wq", "enc2_wkv", "enc2_wo",
                 "dec_q_w",
                 "dec_wq", "dec_wkv", "dec_wo"):
        p[name] = raw[name].astype(jnp.bfloat16)
    p["cost_proj_b"] = raw["cost_proj_b"]
    p["dec_q_b"] = raw["dec_q_b"]

    # lane-pad the 2-wide flow head to 128 so the output store is lane-dense
    dq = raw["flow_w"].shape[0]
    fw = jnp.zeros((dq, LANE), jnp.float32).at[:, :2].set(raw["flow_w"])
    fb = jnp.zeros((1, LANE), jnp.float32).at[:, :2].set(raw["flow_b"])
    p["flow_w"], p["flow_b"] = fw.astype(jnp.bfloat16), fb
    return p


def context_encoder(patches, p):
    # TODO(synk): full TwinsSVTLarge backbone (4 stages, LSA/GSA blocks) not
    # provided; patch-embed (with folded 2x-1 norm) + one flash self-attention block.
    x = pallas_linear(patches, p["ctx_embed_w"], p["ctx_embed_b"])
    x = pallas_attention(x, x, p["ctx_wq"], p["ctx_wkv"], p["ctx_wo"])
    return x  # [B, N, Dc]


def memory_encoder(patches1, patches2, context, p):
    B = patches1.shape[0]
    # one launch for both frames (shared weights): stack along batch
    both = jnp.concatenate([patches1, patches2], axis=0)          # [2B, N, Din]
    feats = pallas_linear(both, p["feat_w"], p["feat_b"])
    f1, f2 = feats[:B], feats[B:]
    # 4D cost volume (flattened to [B, N_src, N_tgt]) -- tiled along target axis
    cost_maps = pallas_cost_volume(f1, f2)
    # cost tokenization via re-association (no NxN re-read from HBM)
    cost_tokens = pallas_cost_tokens(f1, f2, p["cost_proj_w"], p["cost_proj_b"])
    # latent cost transformer (context cross-attention + self-attention)
    cost_memory = pallas_attention(cost_tokens, context,
                                   p["enc_wq"], p["enc_wkv"], p["enc_wo"])
    cost_memory = pallas_attention(cost_memory, cost_memory,
                                   p["enc2_wq"], p["enc2_wkv"], p["enc2_wo"])
    return cost_memory, cost_maps


def memory_decoder(cost_memory, context, cost_maps, query_latent_dim, p, img_shape):
    # TODO(synk): recurrent GMA update iterations + local cost sampling + convex
    # upsampling not provided; a single cost-conditioned cross-attention decode
    # step + flow head + 8x nearest upsample stands in.
    del query_latent_dim
    B, H, W = img_shape
    # cost-conditioned query: stand-in for the decoder's cost-map lookup
    q_in = jnp.concatenate([context, cost_maps], axis=-1)          # [B, N, Dc+N]
    q = pallas_linear(q_in, p["dec_q_w"], p["dec_q_b"])            # [B, N, Dq]
    x = pallas_attention(q, cost_memory, p["dec_wq"], p["dec_wkv"], p["dec_wo"])
    flow_pad = pallas_linear(x, p["flow_w"], p["flow_b"])          # [B, N, 128]
    flow_lr = flow_pad[..., :2]                                    # slice padded lanes
    H8, W8 = H // PATCH, W // PATCH
    flow8 = flow_lr.reshape(B, H8, W8, 2) * float(PATCH)
    flow_up = jnp.repeat(jnp.repeat(flow8, PATCH, axis=1), PATCH, axis=2)
    flow_up = jnp.transpose(flow_up, (0, 3, 1, 2))                 # NCHW [B, 2, H, W]
    return [flow_up]


@functools.partial(jax.jit, static_argnums=(3,))
def flowformer_forward(image1, image2, params, query_latent_dim):
    # image1/2: NCHW float32 in [0, 1]; the 2*x-1 normalization is folded into
    # the patch-embed / feature-embed weights inside _prepare_params.
    B, C, H, W = image1.shape
    p = _prepare_params(params)
    patches1 = _extract_patches(image1)
    patches2 = _extract_patches(image2)

    context = context_encoder(patches1, p)
    cost_memory, cost_maps = memory_encoder(patches1, patches2, context, p)
    flow_predictions = memory_decoder(cost_memory, context, cost_maps,
                                      query_latent_dim, p, (B, H, W))
    return flow_predictions


# ------------------------------ parameter init -------------------------------

def init_params(key, N, Dc=LANE, Df=LANE, Dm=LANE, Dq=LANE, Dh=LANE,
                patch_in=PATCH * PATCH * 3):
    shapes = {
        "ctx_embed_w": (patch_in, Dc), "ctx_embed_b": (1, Dc),
        "ctx_wq": (Dc, Dh), "ctx_wkv": (Dc, 2 * Dh), "ctx_wo": (Dh, Dc),
        "feat_w": (patch_in, Df), "feat_b": (1, Df),
        "cost_proj_w": (N, Dm), "cost_proj_b": (1, Dm),
        "enc_wq": (Dm, Dh), "enc_wkv": (Dc, 2 * Dh), "enc_wo": (Dh, Dm),
        "enc2_wq": (Dm, Dh), "enc2_wkv": (Dm, 2 * Dh), "enc2_wo": (Dh, Dm),
        "dec_q_w": (Dc + N, Dq), "dec_q_b": (1, Dq),
        "dec_wq": (Dq, Dh), "dec_wkv": (Dm, 2 * Dh), "dec_wo": (Dh, Dq),
        "flow_w": (Dq, 2), "flow_b": (1, 2),
    }
    params = {}
    keys = jax.random.split(key, len(shapes))
    for k, (name, shape) in zip(keys, shapes.items()):
        fan_in = shape[0]
        params[name] = (jax.random.normal(k, shape, jnp.float32)
                        / jnp.sqrt(jnp.float32(fan_in)))
    return params


# ----------------------------------- main ------------------------------------

if __name__ == "__main__":
    B, C, H, W = 2, 3, 32, 32
    N = (H // PATCH) * (W // PATCH)        # 16 tokens at 1/8 resolution
    QUERY_LATENT_DIM = LANE

    key = jax.random.PRNGKey(0)
    k_img1, k_img2, k_param = jax.random.split(key, 3)
    image1 = jax.random.uniform(k_img1, (B, C, H, W), jnp.float32)
    image2 = jax.random.uniform(k_img2, (B, C, H, W), jnp.float32)

    params = init_params(k_param, N)

    flow_predictions = flowformer_forward(image1, image2, params,
                                          QUERY_LATENT_DIM)
    jax.block_until_ready(flow_predictions)
    assert flow_predictions[0].shape == (B, 2, H, W)
    assert bool(jnp.all(jnp.isfinite(flow_predictions[0])))
    print("KERNEL_OK")
</pallas_src>

<mosaic_0001>
module attributes {stable_mosaic.version = 11 : i64} {
  func.func @_linear_kernel(%arg0: i32, %arg1: memref<1x16x192xf32, #tpu.memory_space<vmem>>, %arg2: memref<192x128xbf16, #tpu.memory_space<vmem>>, %arg3: memref<1x128xf32, #tpu.memory_space<vmem>>, %arg4: memref<1x16x128xf32, #tpu.memory_space<vmem>>) attributes {dimension_semantics = [#tpu.dimension_semantics<parallel>], iteration_bounds = array<i64: 4>, scalar_prefetch = 0 : i64, scratch_operands = 0 : i64, tpu.core_type = #tpu.core_type<tc>, window_params = [{transform_indices = @transform_0, window_bounds = array<i64: 1, 16, 192>}, {pipeline_mode = #tpu.pipeline_mode<synchronous>, transform_indices = @transform_1, window_bounds = array<i64: 192, 128>}, {pipeline_mode = #tpu.pipeline_mode<synchronous>, transform_indices = @transform_2, window_bounds = array<i64: 1, 128>}, {transform_indices = @transform_3, window_bounds = array<i64: 1, 16, 128>}]} {
    %c0 = arith.constant 0 : index
    %c0_0 = arith.constant 0 : index
    %c0_1 = arith.constant 0 : index
    %0 = vector.load %arg1[%c0, %c0_0, %c0_1] : memref<1x16x192xf32, #tpu.memory_space<vmem>>, vector<1x16x192xf32>
    %1 = vector.shape_cast %0 : vector<1x16x192xf32> to vector<16x192xf32>
    %2 = arith.truncf %1 : vector<16x192xf32> to vector<16x192xbf16>
    %c0_2 = arith.constant 0 : index
    %c0_3 = arith.constant 0 : index
    %3 = vector.load %arg2[%c0_2, %c0_3] : memref<192x128xbf16, #tpu.memory_space<vmem>>, vector<192x128xbf16>
    %cst = arith.constant dense<0.000000e+00> : vector<16x128xf32>
    %4 = tpu.matmul %2, %3, %cst {dimension_numbers = #tpu.dot_dimension_numbers<[1], [0], [0], [1], [0, 0, 1, 1], [], []>} : vector<16x192xbf16>, vector<192x128xbf16>, vector<16x128xf32> -> vector<16x128xf32>
    %c0_4 = arith.constant 0 : index
    %c0_5 = arith.constant 0 : index
    %5 = vector.load %arg3[%c0_4, %c0_5] : memref<1x128xf32, #tpu.memory_space<vmem>>, vector<1x128xf32>
    %6 = vector.broadcast %5 : vector<1x128xf32> to vector<16x128xf32>
    %7 = arith.addf %4, %6 : vector<16x128xf32>
    %c0_6 = arith.constant 0 : index
    %c0_7 = arith.constant 0 : index
    %c0_8 = arith.constant 0 : index
    %8 = vector.load %arg4[%c0_6, %c0_7, %c0_8] : memref<1x16x128xf32, #tpu.memory_space<vmem>>, vector<1x16x128xf32>
    %9 = vector.shape_cast %8 : vector<1x16x128xf32> to vector<16x128xf32>
    %10 = vector.shape_cast %7 : vector<16x128xf32> to vector<1x16x128xf32>
    tpu.vector_store %arg4[%c0_6, %c0_7, %c0_8], %10 {strides = array<i32>} : memref<1x16x128xf32, #tpu.memory_space<vmem>>, vector<1x16x128xf32>,
    return
  }
  func.func @transform_0(%arg0: i32) -> (i32, i32, i32) {
    %c0_i32 = arith.constant 0 : i32
    %c0_i32_0 = arith.constant 0 : i32
    %c0_i32_1 = arith.constant 0 : i32
    return %arg0, %c0_i32, %c0_i32_0 : i32, i32, i32
  }
  func.func @transform_1(%arg0: i32) -> (i32, i32) {
    %c0_i32 = arith.constant 0 : i32
    %c0_i32_0 = arith.constant 0 : i32
    %c0_i32_1 = arith.constant 0 : i32
    return %c0_i32, %c0_i32_0 : i32, i32
  }
  func.func @transform_2(%arg0: i32) -> (i32, i32) {
    %c0_i32 = arith.constant 0 : i32
    %c0_i32_0 = arith.constant 0 : i32
    %c0_i32_1 = arith.constant 0 : i32
    return %c0_i32, %c0_i32_0 : i32, i32
  }
  func.func @transform_3(%arg0: i32) -> (i32, i32, i32) {
    %c0_i32 = arith.constant 0 : i32
    %c0_i32_0 = arith.constant 0 : i32
    %c0_i32_1 = arith.constant 0 : i32
    return %arg0, %c0_i32, %c0_i32_0 : i32, i32, i32
  }
}

module attributes {stable_mosaic.version = 11 : i64} {
  func.func @_cost_tokens_kernel(%arg0: i32, %arg1: memref<1x16x128xf32, #tpu.memory_space<vmem>>, %arg2: memref<1x16x128xf32, #tpu.memory_space<vmem>>, %arg3: memref<16x128xbf16, #tpu.memory_space<vmem>>, %arg4: memref<1x128xf32, #tpu.memory_space<vmem>>, %arg5: memref<1x16x128xf32, #tpu.memory_space<vmem>>) attributes {dimension_semantics = [#tpu.dimension_semantics<parallel>], iteration_bounds = array<i64: 2>, scalar_prefetch = 0 : i64, scratch_operands = 0 : i64, tpu.core_type = #tpu.core_type<tc>, window_params = [{transform_indices = @transform_0, window_bounds = array<i64: 1, 16, 128>}, {transform_indices = @transform_1, window_bounds = array<i64: 1, 16, 128>}, {pipeline_mode = #tpu.pipeline_mode<synchronous>, transform_indices = @transform_2, window_bounds = array<i64: 16, 128>}, {pipeline_mode = #tpu.pipeline_mode<synchronous>, transform_indices = @transform_3, window_bounds = array<i64: 1, 128>}, {transform_indices = @transform_4, window_bounds = array<i64: 1, 16, 128>}]} {
    %c0 = arith.constant 0 : index
    %c0_0 = arith.constant 0 : index
    %c0_1 = arith.constant 0 : index
    %0 = vector.load %arg2[%c0, %c0_0, %c0_1] : memref<1x16x128xf32, #tpu.memory_space<vmem>>, vector<1x16x128xf32>
    %1 = vector.shape_cast %0 : vector<1x16x128xf32> to vector<16x128xf32>
    %2 = arith.truncf %1 : vector<16x128xf32> to vector<16x128xbf16>
    %3 = tpu.transpose %2, [1, 0] : vector<16x128xbf16> -> vector<128x16xbf16>
    %c0_2 = arith.constant 0 : index
    %c0_3 = arith.constant 0 : index
    %4 = vector.load %arg3[%c0_2, %c0_3] : memref<16x128xbf16, #tpu.memory_space<vmem>>, vector<16x128xbf16>
    %cst = arith.constant dense<0.000000e+00> : vector<128x128xf32>
    %5 = tpu.matmul %3, %4, %cst {dimension_numbers = #tpu.dot_dimension_numbers<[1], [0], [0], [1], [0, 0, 1, 1], [], []>} : vector<128x16xbf16>, vector<16x128xbf16>, vector<128x128xf32> -> vector<128x128xf32>
    %c0_4 = arith.constant 0 : index
    %c0_5 = arith.constant 0 : index
    %c0_6 = arith.constant 0 : index
    %6 = vector.load %arg1[%c0_4, %c0_5, %c0_6] : memref<1x16x128xf32, #tpu.memory_space<vmem>>, vector<1x16x128xf32>
    %7 = vector.shape_cast %6 : vector<1x16x128xf32> to vector<16x128xf32>
    %8 = arith.truncf %7 : vector<16x128xf32> to vector<16x128xbf16>
    %9 = arith.truncf %5 : vector<128x128xf32> to vector<128x128xbf16>
    %cst_7 = arith.constant dense<0.000000e+00> : vector<16x128xf32>
    %10 = tpu.matmul %8, %9, %cst_7 {dimension_numbers = #tpu.dot_dimension_numbers<[1], [0], [0], [1], [0, 0, 1, 1], [], []>} : vector<16x128xbf16>, vector<128x128xbf16>, vector<16x128xf32> -> vector<16x128xf32>
    %cst_8 = arith.constant 1.280000e+02 : f32
    %11 = math.sqrt %cst_8 : f32
    %cst_9 = arith.constant 1.000000e+00 : f32
    %12 = arith.divf %cst_9, %11 : f32
    %13 = vector.broadcast %12 : f32 to vector<16x128xf32>
    %14 = arith.mulf %10, %13 : vector<16x128xf32>
    %c0_10 = arith.constant 0 : index
    %c0_11 = arith.constant 0 : index
    %15 = vector.load %arg4[%c0_10, %c0_11] : memref<1x128xf32, #tpu.memory_space<vmem>>, vector<1x128xf32>
    %16 = vector.broadcast %15 : vector<1x128xf32> to vector<16x128xf32>
    %17 = arith.addf %14, %16 : vector<16x128xf32>
    %c0_12 = arith.constant 0 : index
    %c0_13 = arith.constant 0 : index
    %c0_14 = arith.constant 0 : index
    %18 = vector.load %arg5[%c0_12, %c0_13, %c0_14] : memref<1x16x128xf32, #tpu.memory_space<vmem>>, vector<1x16x128xf32>
    %19 = vector.shape_cast %18 : vector<1x16x128xf32> to vector<16x128xf32>
    %20 = vector.shape_cast %17 : vector<16x128xf32> to vector<1x16x128xf32>
    tpu.vector_store %arg5[%c0_12, %c0_13, %c0_14], %20 {strides = array<i32>} : memref<1x16x128xf32, #tpu.memory_space<vmem>>, vector<1x16x128xf32>,
    return
  }
  func.func @transform_0(%arg0: i32) -> (i32, i32, i32) {
    %c0_i32 = arith.constant 0 : i32
    %c0_i32_0 = arith.constant 0 : i32
    %c0_i32_1 = arith.constant 0 : i32
    return %arg0, %c0_i32, %c0_i32_0 : i32, i32, i32
  }
  func.func @transform_1(%arg0: i32) -> (i32, i32, i32) {
    %c0_i32 = arith.constant 0 : i32
    %c0_i32_0 = arith.constant 0 : i32
    %c0_i32_1 = arith.constant 0 : i32
    return %arg0, %c0_i32, %c0_i32_0 : i32, i32, i32
  }
  func.func @transform_2(%arg0: i32) -> (i32, i32) {
    %c0_i32 = arith.constant 0 : i32
    %c0_i32_0 = arith.constant 0 : i32
    %c0_i32_1 = arith.constant 0 : i32
    return %c0_i32, %c0_i32_0 : i32, i32
  }
  func.func @transform_3(%arg0: i32) -> (i32, i32) {
    %c0_i32 = arith.constant 0 : i32
    %c0_i32_0 = arith.constant 0 : i32
    %c0_i32_1 = arith.constant 0 : i32
    return %c0_i32, %c0_i32_0 : i32, i32
  }
  func.func @transform_4(%arg0: i32) -> (i32, i32, i32) {
    %c0_i32 = arith.constant 0 : i32
    %c0_i32_0 = arith.constant 0 : i32
    %c0_i32_1 = arith.constant 0 : i32
    return %arg0, %c0_i32, %c0_i32_0 : i32, i32, i32
  }
}

module attributes {stable_mosaic.version = 11 : i64} {
  func.func @_linear_kernel(%arg0: i32, %arg1: memref<1x16x192xf32, #tpu.memory_space<vmem>>, %arg2: memref<192x128xbf16, #tpu.memory_space<vmem>>, %arg3: memref<1x128xf32, #tpu.memory_space<vmem>>, %arg4: memref<1x16x128xf32, #tpu.memory_space<vmem>>) attributes {dimension_semantics = [#tpu.dimension_semantics<parallel>], iteration_bounds = array<i64: 2>, scalar_prefetch = 0 : i64, scratch_operands = 0 : i64, tpu.core_type = #tpu.core_type<tc>, window_params = [{transform_indices = @transform_0, window_bounds = array<i64: 1, 16, 192>}, {pipeline_mode = #tpu.pipeline_mode<synchronous>, transform_indices = @transform_1, window_bounds = array<i64: 192, 128>}, {pipeline_mode = #tpu.pipeline_mode<synchronous>, transform_indices = @transform_2, window_bounds = array<i64: 1, 128>}, {transform_indices = @transform_3, window_bounds = array<i64: 1, 16, 128>}]} {
    %c0 = arith.constant 0 : index
    %c0_0 = arith.constant 0 : index
    %c0_1 = arith.constant 0 : index
    %0 = vector.load %arg1[%c0, %c0_0, %c0_1] : memref<1x16x192xf32, #tpu.memory_space<vmem>>, vector<1x16x192xf32>
    %1 = vector.shape_cast %0 : vector<1x16x192xf32> to vector<16x192xf32>
    %2 = arith.truncf %1 : vector<16x192xf32> to vector<16x192xbf16>
    %c0_2 = arith.constant 0 : index
    %c0_3 = arith.constant 0 : index
    %3 = vector.load %arg2[%c0_2, %c0_3] : memref<192x128xbf16, #tpu.memory_space<vmem>>, vector<192x128xbf16>
    %cst = arith.constant dense<0.000000e+00> : vector<16x128xf32>
    %4 = tpu.matmul %2, %3, %cst {dimension_numbers = #tpu.dot_dimension_numbers<[1], [0], [0], [1], [0, 0, 1, 1], [], []>} : vector<16x192xbf16>, vector<192x128xbf16>, vector<16x128xf32> -> vector<16x128xf32>
    %c0_4 = arith.constant 0 : index
    %c0_5 = arith.constant 0 : index
    %5 = vector.load %arg3[%c0_4, %c0_5] : memref<1x128xf32, #tpu.memory_space<vmem>>, vector<1x128xf32>
    %6 = vector.broadcast %5 : vector<1x128xf32> to vector<16x128xf32>
    %7 = arith.addf %4, %6 : vector<16x128xf32>
    %c0_6 = arith.constant 0 : index
    %c0_7 = arith.constant 0 : index
    %c0_8 = arith.constant 0 : index
    %8 = vector.load %arg4[%c0_6, %c0_7, %c0_8] : memref<1x16x128xf32, #tpu.memory_space<vmem>>, vector<1x16x128xf32>
    %9 = vector.shape_cast %8 : vector<1x16x128xf32> to vector<16x128xf32>
    %10 = vector.shape_cast %7 : vector<16x128xf32> to vector<1x16x128xf32>
    tpu.vector_store %arg4[%c0_6, %c0_7, %c0_8], %10 {strides = array<i32>} : memref<1x16x128xf32, #tpu.memory_space<vmem>>, vector<1x16x128xf32>,
    return
  }
  func.func @transform_0(%arg0: i32) -> (i32, i32, i32) {
    %c0_i32 = arith.constant 0 : i32
    %c0_i32_0 = arith.constant 0 : i32
    %c0_i32_1 = arith.constant 0 : i32
    return %arg0, %c0_i32, %c0_i32_0 : i32, i32, i32
  }
  func.func @transform_1(%arg0: i32) -> (i32, i32) {
    %c0_i32 = arith.constant 0 : i32
    %c0_i32_0 = arith.constant 0 : i32
    %c0_i32_1 = arith.constant 0 : i32
    return %c0_i32, %c0_i32_0 : i32, i32
  }
  func.func @transform_2(%arg0: i32) -> (i32, i32) {
    %c0_i32 = arith.constant 0 : i32
    %c0_i32_0 = arith.constant 0 : i32
    %c0_i32_1 = arith.constant 0 : i32
    return %c0_i32, %c0_i32_0 : i32, i32
  }
  func.func @transform_3(%arg0: i32) -> (i32, i32, i32) {
    %c0_i32 = arith.constant 0 : i32
    %c0_i32_0 = arith.constant 0 : i32
    %c0_i32_1 = arith.constant 0 : i32
    return %arg0, %c0_i32, %c0_i32_0 : i32, i32, i32
  }
}

module attributes {stable_mosaic.version = 11 : i64} {
  func.func @_cost_volume_kernel(%arg0: i32, %arg1: i32, %arg2: memref<1x16x128xf32, #tpu.memory_space<vmem>>, %arg3: memref<1x16x128xf32, #tpu.memory_space<vmem>>, %arg4: memref<1x16x16xf32, #tpu.memory_space<vmem>>) attributes {dimension_semantics = [#tpu.dimension_semantics<parallel>, #tpu.dimension_semantics<parallel>], iteration_bounds = array<i64: 2, 1>, scalar_prefetch = 0 : i64, scratch_operands = 0 : i64, tpu.core_type = #tpu.core_type<tc>, window_params = [{transform_indices = @transform_0, window_bounds = array<i64: 1, 16, 128>}, {transform_indices = @transform_1, window_bounds = array<i64: 1, 16, 128>}, {transform_indices = @transform_2, window_bounds = array<i64: 1, 16, 16>}]} {
    %c0 = arith.constant 0 : index
    %c0_0 = arith.constant 0 : index
    %c0_1 = arith.constant 0 : index
    %0 = vector.load %arg2[%c0, %c0_0, %c0_1] : memref<1x16x128xf32, #tpu.memory_space<vmem>>, vector<1x16x128xf32>
    %1 = vector.shape_cast %0 : vector<1x16x128xf32> to vector<16x128xf32>
    %2 = arith.truncf %1 : vector<16x128xf32> to vector<16x128xbf16>
    %c0_2 = arith.constant 0 : index
    %c0_3 = arith.constant 0 : index
    %c0_4 = arith.constant 0 : index
    %3 = vector.load %arg3[%c0_2, %c0_3, %c0_4] : memref<1x16x128xf32, #tpu.memory_space<vmem>>, vector<1x16x128xf32>
    %4 = vector.shape_cast %3 : vector<1x16x128xf32> to vector<16x128xf32>
    %5 = arith.truncf %4 : vector<16x128xf32> to vector<16x128xbf16>
    %6 = tpu.transpose %5, [1, 0] : vector<16x128xbf16> -> vector<128x16xbf16>
    %cst = arith.constant dense<0.000000e+00> : vector<16x16xf32>
    %7 = tpu.matmul %2, %6, %cst {dimension_numbers = #tpu.dot_dimension_numbers<[1], [0], [0], [1], [0, 0, 1, 1], [], []>} : vector<16x128xbf16>, vector<128x16xbf16>, vector<16x16xf32> -> vector<16x16xf32>
    %cst_5 = arith.constant 1.280000e+02 : f32
    %8 = math.sqrt %cst_5 : f32
    %cst_6 = arith.constant 1.000000e+00 : f32
    %9 = arith.divf %cst_6, %8 : f32
    %10 = vector.broadcast %9 : f32 to vector<16x16xf32>
    %11 = arith.mulf %7, %10 : vector<16x16xf32>
    %c0_7 = arith.constant 0 : index
    %c0_8 = arith.constant 0 : index
    %c0_9 = arith.constant 0 : index
    %12 = vector.load %arg4[%c0_7, %c0_8, %c0_9] : memref<1x16x16xf32, #tpu.memory_space<vmem>>, vector<1x16x16xf32>
    %13 = vector.shape_cast %12 : vector<1x16x16xf32> to vector<16x16xf32>
    %14 = vector.shape_cast %11 : vector<16x16xf32> to vector<1x16x16xf32>
    tpu.vector_store %arg4[%c0_7, %c0_8, %c0_9], %14 {strides = array<i32>} : memref<1x16x16xf32, #tpu.memory_space<vmem>>, vector<1x16x16xf32>,
    return
  }
  func.func @transform_0(%arg0: i32, %arg1: i32) -> (i32, i32, i32) {
    %c0_i32 = arith.constant 0 : i32
    %c0_i32_0 = arith.constant 0 : i32
    %c0_i32_1 = arith.constant 0 : i32
    return %arg0, %c0_i32, %c0_i32_0 : i32, i32, i32
  }
  func.func @transform_1(%arg0: i32, %arg1: i32) -> (i32, i32, i32) {
    %c0_i32 = arith.constant 0 : i32
    %c0_i32_0 = arith.constant 0 : i32
    return %arg0, %arg1, %c0_i32 : i32, i32, i32
  }
  func.func @transform_2(%arg0: i32, %arg1: i32) -> (i32, i32, i32) {
    %c0_i32 = arith.constant 0 : i32
    %c0_i32_0 = arith.constant 0 : i32
    return %arg0, %c0_i32, %arg1 : i32, i32, i32
  }
}

module attributes {stable_mosaic.version = 11 : i64} {
  func.func @_flash_attn_kernel(%arg0: i32, %arg1: i32, %arg2: i32, %arg3: memref<1x16x128xf32, #tpu.memory_space<vmem>>, %arg4: memref<1x16x128xf32, #tpu.memory_space<vmem>>, %arg5: memref<128x128xbf16, #tpu.memory_space<vmem>>, %arg6: memref<128x256xbf16, #tpu.memory_space<vmem>>, %arg7: memref<128x128xbf16, #tpu.memory_space<vmem>>, %arg8: memref<1x16x128xf32, #tpu.memory_space<vmem>>, %arg9: memref<16x128xbf16, #tpu.memory_space<vmem>>, %arg10: memref<16x1xf32, #tpu.memory_space<vmem>>, %arg11: memref<16x1xf32, #tpu.memory_space<vmem>>, %arg12: memref<16x128xf32, #tpu.memory_space<vmem>>) attributes {dimension_semantics = [#tpu.dimension_semantics<parallel>, #tpu.dimension_semantics<parallel>, #tpu.dimension_semantics<arbitrary>], iteration_bounds = array<i64: 2, 1, 1>, scalar_prefetch = 0 : i64, scratch_operands = 4 : i64, tpu.core_type = #tpu.core_type<tc>, window_params = [{transform_indices = @transform_0, window_bounds = array<i64: 1, 16, 128>}, {transform_indices = @transform_1, window_bounds = array<i64: 1, 16, 128>}, {pipeline_mode = #tpu.pipeline_mode<synchronous>, transform_indices = @transform_2, window_bounds = array<i64: 128, 128>}, {pipeline_mode = #tpu.pipeline_mode<synchronous>, transform_indices = @transform_3, window_bounds = array<i64: 128, 256>}, {pipeline_mode = #tpu.pipeline_mode<synchronous>, transform_indices = @transform_4, window_bounds = array<i64: 128, 128>}, {transform_indices = @transform_5, window_bounds = array<i64: 1, 16, 128>}]} {
    %c0_i32 = arith.constant 0 : i32
    %0 = arith.cmpi eq, %arg2, %c0_i32 : i32
    %1 = arith.extui %0 : i1 to i32
    %c0_i32_0 = arith.constant 0 : i32
    %2 = arith.cmpi ne, %1, %c0_i32_0 : i32
    scf.if %2 {
      %c0_27 = arith.constant 0 : index
      %c0_28 = arith.constant 0 : index
      %c0_29 = arith.constant 0 : index
      %42 = vector.load %arg3[%c0_27, %c0_28, %c0_29] : memref<1x16x128xf32, #tpu.memory_space<vmem>>, vector<1x16x128xf32>
      %43 = vector.shape_cast %42 : vector<1x16x128xf32> to vector<16x128xf32>
      %44 = arith.truncf %43 : vector<16x128xf32> to vector<16x128xbf16>
      %c0_30 = arith.constant 0 : index
      %c0_31 = arith.constant 0 : index
      %45 = vector.load %arg5[%c0_30, %c0_31] : memref<128x128xbf16, #tpu.memory_space<vmem>>, vector<128x128xbf16>
      %cst_32 = arith.constant dense<0.000000e+00> : vector<16x128xf32>
      %46 = tpu.matmul %44, %45, %cst_32 {dimension_numbers = #tpu.dot_dimension_numbers<[1], [0], [0], [1], [0, 0, 1, 1], [], []>} : vector<16x128xbf16>, vector<128x128xbf16>, vector<16x128xf32> -> vector<16x128xf32>
      %cst_33 = arith.constant 1.280000e+02 : f32
      %47 = math.sqrt %cst_33 : f32
      %cst_34 = arith.constant 1.000000e+00 : f32
      %48 = arith.divf %cst_34, %47 : f32
      %49 = vector.broadcast %48 : f32 to vector<16x128xf32>
      %50 = arith.mulf %46, %49 : vector<16x128xf32>
      %51 = arith.truncf %50 : vector<16x128xf32> to vector<16x128xbf16>
      %c0_35 = arith.constant 0 : index
      %c0_36 = arith.constant 0 : index
      %52 = vector.load %arg9[%c0_35, %c0_36] : memref<16x128xbf16, #tpu.memory_space<vmem>>, vector<16x128xbf16>
      tpu.vector_store %arg9[%c0_35, %c0_36], %51 {strides = array<i32>} : memref<16x128xbf16, #tpu.memory_space<vmem>>, vector<16x128xbf16>,
      %cst_37 = arith.constant 0xFF800000 : f32
      %53 = vector.broadcast %cst_37 : f32 to vector<16x1xf32>
      %c0_38 = arith.constant 0 : index
      %c0_39 = arith.constant 0 : index
      %54 = vector.load %arg10[%c0_38, %c0_39] : memref<16x1xf32, #tpu.memory_space<vmem>>, vector<16x1xf32>
      tpu.vector_store %arg10[%c0_38, %c0_39], %53 {strides = array<i32>} : memref<16x1xf32, #tpu.memory_space<vmem>>, vector<16x1xf32>,
      %cst_40 = arith.constant 0.000000e+00 : f32
      %55 = vector.broadcast %cst_40 : f32 to vector<16x1xf32>
      %c0_41 = arith.constant 0 : index
      %c0_42 = arith.constant 0 : index
      %56 = vector.load %arg11[%c0_41, %c0_42] : memref<16x1xf32, #tpu.memory_space<vmem>>, vector<16x1xf32>
      tpu.vector_store %arg11[%c0_41, %c0_42], %55 {strides = array<i32>} : memref<16x1xf32, #tpu.memory_space<vmem>>, vector<16x1xf32>,
      %cst_43 = arith.constant 0.000000e+00 : f32
      %57 = vector.broadcast %cst_43 : f32 to vector<16x128xf32>
      %c0_44 = arith.constant 0 : index
      %c0_45 = arith.constant 0 : index
      %58 = vector.load %arg12[%c0_44, %c0_45] : memref<16x128xf32, #tpu.memory_space<vmem>>, vector<16x128xf32>
      tpu.vector_store %arg12[%c0_44, %c0_45], %57 {strides = array<i32>} : memref<16x128xf32, #tpu.memory_space<vmem>>, vector<16x128xf32>,
    } else {
    }
    %c0 = arith.constant 0 : index
    %c0_1 = arith.constant 0 : index
    %c0_2 = arith.constant 0 : index
    %3 = vector.load %arg4[%c0, %c0_1, %c0_2] : memref<1x16x128xf32, #tpu.memory_space<vmem>>, vector<1x16x128xf32>
    %4 = vector.shape_cast %3 : vector<1x16x128xf32> to vector<16x128xf32>
    %5 = arith.truncf %4 : vector<16x128xf32> to vector<16x128xbf16>
    %c0_3 = arith.constant 0 : index
    %c0_4 = arith.constant 0 : index
    %6 = vector.load %arg6[%c0_3, %c0_4] : memref<128x256xbf16, #tpu.memory_space<vmem>>, vector<128x256xbf16>
    %cst = arith.constant dense<0.000000e+00> : vector<16x256xf32>
    %7 = tpu.matmul %5, %6, %cst {dimension_numbers = #tpu.dot_dimension_numbers<[1], [0], [0], [1], [0, 0, 1, 1], [], []>} : vector<16x128xbf16>, vector<128x256xbf16>, vector<16x256xf32> -> vector<16x256xf32>
    %8 = vector.extract_strided_slice %7 {offsets = [0, 0], sizes = [16, 128], strides = [1, 1]} : vector<16x256xf32> to vector<16x128xf32>
    %9 = arith.truncf %8 : vector<16x128xf32> to vector<16x128xbf16>
    %10 = vector.extract_strided_slice %7 {offsets = [0, 128], sizes = [16, 128], strides = [1, 1]} : vector<16x256xf32> to vector<16x128xf32>
    %11 = arith.truncf %10 : vector<16x128xf32> to vector<16x128xbf16>
    %c0_5 = arith.constant 0 : index
    %c0_6 = arith.constant 0 : index
    %12 = vector.load %arg9[%c0_5, %c0_6] : memref<16x128xbf16, #tpu.memory_space<vmem>>, vector<16x128xbf16>
    %13 = tpu.transpose %9, [1, 0] : vector<16x128xbf16> -> vector<128x16xbf16>
    %cst_7 = arith.constant dense<0.000000e+00> : vector<16x16xf32>
    %14 = tpu.matmul %12, %13, %cst_7 {dimension_numbers = #tpu.dot_dimension_numbers<[1], [0], [0], [1], [0, 0, 1, 1], [], []>} : vector<16x128xbf16>, vector<128x16xbf16>, vector<16x16xf32> -> vector<16x16xf32>
    %c0_8 = arith.constant 0 : index
    %c0_9 = arith.constant 0 : index
    %15 = vector.load %arg10[%c0_8, %c0_9] : memref<16x1xf32, #tpu.memory_space<vmem>>, vector<16x1xf32>
    %cst_10 = arith.constant dense<0xFF800000> : vector<16xf32>
    %16 = vector.multi_reduction <maximumf>, %14, %cst_10 [1] : vector<16x16xf32> to vector<16xf32>
    %17 = vector.shape_cast %16 : vector<16xf32> to vector<16x1xf32>
    %18 = arith.maximumf %15, %17 : vector<16x1xf32>
    %c0_11 = arith.constant 0 : index
    %c0_12 = arith.constant 0 : index
    %19 = vector.load %arg10[%c0_11, %c0_12] : memref<16x1xf32, #tpu.memory_space<vmem>>, vector<16x1xf32>
    %20 = arith.subf %19, %18 : vector<16x1xf32>
    %21 = math.exp %20 : vector<16x1xf32>
    %22 = vector.broadcast %18 : vector<16x1xf32> to vector<16x16xf32>
    %23 = arith.subf %14, %22 : vector<16x16xf32>
    %24 = math.exp %23 : vector<16x16xf32>
    %c0_13 = arith.constant 0 : index
    %c0_14 = arith.constant 0 : index
    %25 = vector.load %arg11[%c0_13, %c0_14] : memref<16x1xf32, #tpu.memory_space<vmem>>, vector<16x1xf32>
    %26 = arith.mulf %21, %25 : vector<16x1xf32>
    %cst_15 = arith.constant dense<0.000000e+00> : vector<16xf32>
    %27 = vector.multi_reduction <add>, %24, %cst_15 [1] : vector<16x16xf32> to vector<16xf32>
    %28 = vector.shape_cast %27 : vector<16xf32> to vector<16x1xf32>
    %29 = arith.addf %26, %28 : vector<16x1xf32>
    %c0_16 = arith.constant 0 : index
    %c0_17 = arith.constant 0 : index
    %30 = vector.load %arg11[%c0_16, %c0_17] : memref<16x1xf32, #tpu.memory_space<vmem>>, vector<16x1xf32>
    tpu.vector_store %arg11[%c0_16, %c0_17], %29 {strides = array<i32>} : memref<16x1xf32, #tpu.memory_space<vmem>>, vector<16x1xf32>,
    %c0_18 = arith.constant 0 : index
    %c0_19 = arith.constant 0 : index
    %31 = vector.load %arg12[%c0_18, %c0_19] : memref<16x128xf32, #tpu.memory_space<vmem>>, vector<16x128xf32>
    %32 = vector.broadcast %21 : vector<16x1xf32> to vector<16x128xf32>
    %33 = arith.mulf %32, %31 : vector<16x128xf32>
    %34 = arith.truncf %24 : vector<16x16xf32> to vector<16x16xbf16>
    %cst_20 = arith.constant dense<0.000000e+00> : vector<16x128xf32>
    %35 = tpu.matmul %34, %11, %cst_20 {dimension_numbers = #tpu.dot_dimension_numbers<[1], [0], [0], [1], [0, 0, 1, 1], [], []>} : vector<16x16xbf16>, vector<16x128xbf16>, vector<16x128xf32> -> vector<16x128xf32>
    %36 = arith.addf %33, %35 : vector<16x128xf32>
    %c0_21 = arith.constant 0 : index
    %c0_22 = arith.constant 0 : index
    %37 = vector.load %arg12[%c0_21, %c0_22] : memref<16x128xf32, #tpu.memory_space<vmem>>, vector<16x128xf32>
    tpu.vector_store %arg12[%c0_21, %c0_22], %36 {strides = array<i32>} : memref<16x128xf32, #tpu.memory_space<vmem>>, vector<16x128xf32>,
    %c0_23 = arith.constant 0 : index
    %c0_24 = arith.constant 0 : index
    %38 = vector.load %arg10[%c0_23, %c0_24] : memref<16x1xf32, #tpu.memory_space<vmem>>, vector<16x1xf32>
    tpu.vector_store %arg10[%c0_23, %c0_24], %18 {strides = array<i32>} : memref<16x1xf32, #tpu.memory_space<vmem>>, vector<16x1xf32>,
    %c0_i32_25 = arith.constant 0 : i32
    %39 = arith.cmpi eq, %arg2, %c0_i32_25 : i32
    %40 = arith.extui %39 : i1 to i32
    %c0_i32_26 = arith.constant 0 : i32
    %41 = arith.cmpi ne, %40, %c0_i32_26 : i32
    scf.if %41 {
      %c0_27 = arith.constant 0 : index
      %c0_28 = arith.constant 0 : index
      %42 = vector.load %arg11[%c0_27, %c0_28] : memref<16x1xf32, #tpu.memory_space<vmem>>, vector<16x1xf32>
      %43 = tpu.reciprocal %42 {approx = true} : vector<16x1xf32> -> vector<16x1xf32>
      %c0_29 = arith.constant 0 : index
      %c0_30 = arith.constant 0 : index
      %44 = vector.load %arg12[%c0_29, %c0_30] : memref<16x128xf32, #tpu.memory_space<vmem>>, vector<16x128xf32>
      %45 = vector.broadcast %43 : vector<16x1xf32> to vector<16x128xf32>
      %46 = arith.mulf %44, %45 : vector<16x128xf32>
      %47 = arith.truncf %46 : vector<16x128xf32> to vector<16x128xbf16>
      %c0_31 = arith.constant 0 : index
      %c0_32 = arith.constant 0 : index
      %c0_33 = arith.constant 0 : index
      %48 = vector.load %arg3[%c0_31, %c0_32, %c0_33] : memref<1x16x128xf32, #tpu.memory_space<vmem>>, vector<1x16x128xf32>
      %49 = vector.shape_cast %48 : vector<1x16x128xf32> to vector<16x128xf32>
      %c0_34 = arith.constant 0 : index
      %c0_35 = arith.constant 0 : index
      %50 = vector.load %arg7[%c0_34, %c0_35] : memref<128x128xbf16, #tpu.memory_space<vmem>>, vector<128x128xbf16>
      %cst_36 = arith.constant dense<0.000000e+00> : vector<16x128xf32>
      %51 = tpu.matmul %47, %50, %cst_36 {dimension_numbers = #tpu.dot_dimension_numbers<[1], [0], [0], [1], [0, 0, 1, 1], [], []>} : vector<16x128xbf16>, vector<128x128xbf16>, vector<16x128xf32> -> vector<16x128xf32>
      %52 = arith.addf %49, %51 : vector<16x128xf32>
      %c0_37 = arith.constant 0 : index
      %c0_38 = arith.constant 0 : index
      %c0_39 = arith.constant 0 : index
      %53 = vector.load %arg8[%c0_37, %c0_38, %c0_39] : memref<1x16x128xf32, #tpu.memory_space<vmem>>, vector<1x16x128xf32>
      %54 = vector.shape_cast %53 : vector<1x16x128xf32> to vector<16x128xf32>
      %55 = vector.shape_cast %52 : vector<16x128xf32> to vector<1x16x128xf32>
      tpu.vector_store %arg8[%c0_37, %c0_38, %c0_39], %55 {strides = array<i32>} : memref<1x16x128xf32, #tpu.memory_space<vmem>>, vector<1x16x128xf32>,
    } else {
    }
    return
  }
  func.func @transform_0(%arg0: i32, %arg1: i32, %arg2: i32) -> (i32, i32, i32) {
    %c0_i32 = arith.constant 0 : i32
    %c0_i32_0 = arith.constant 0 : i32
    return %arg0, %arg1, %c0_i32 : i32, i32, i32
  }
  func.func @transform_1(%arg0: i32, %arg1: i32, %arg2: i32) -> (i32, i32, i32) {
    %c0_i32 = arith.constant 0 : i32
    %c0_i32_0 = arith.constant 0 : i32
    return %arg0, %arg2, %c0_i32 : i32, i32, i32
  }
  func.func @transform_2(%arg0: i32, %arg1: i32, %arg2: i32) -> (i32, i32) {
    %c0_i32 = arith.constant 0 : i32
    %c0_i32_0 = arith.constant 0 : i32
    %c0_i32_1 = arith.constant 0 : i32
    return %c0_i32, %c0_i32_0 : i32, i32
  }
  func.func @transform_3(%arg0: i32, %arg1: i32, %arg2: i32) -> (i32, i32) {
    %c0_i32 = arith.constant 0 : i32
    %c0_i32_0 = arith.constant 0 : i32
    %c0_i32_1 = arith.constant 0 : i32
    return %c0_i32, %c0_i32_0 : i32, i32
  }
  func.func @transform_4(%arg0: i32, %arg1: i32, %arg2: i32) -> (i32, i32) {
    %c0_i32 = arith.constant 0 : i32
    %c0_i32_0 = arith.constant 0 : i32
    %c0_i32_1 = arith.constant 0 : i32
    return %c0_i32, %c0_i32_0 : i32, i32
  }
  func.func @transform_5(%arg0: i32, %arg1: i32, %arg2: i32) -> (i32, i32, i32) {
    %c0_i32 = arith.constant 0 : i32
    %c0_i32_0 = arith.constant 0 : i32
    return %arg0, %arg1, %c0_i32 : i32, i32, i32
  }
}

module attributes {stable_mosaic.version = 11 : i64} {
  func.func @_linear_kernel(%arg0: i32, %arg1: memref<1x16x144xf32, #tpu.memory_space<vmem>>, %arg2: memref<144x128xbf16, #tpu.memory_space<vmem>>, %arg3: memref<1x128xf32, #tpu.memory_space<vmem>>, %arg4: memref<1x16x128xf32, #tpu.memory_space<vmem>>) attributes {dimension_semantics = [#tpu.dimension_semantics<parallel>], iteration_bounds = array<i64: 2>, scalar_prefetch = 0 : i64, scratch_operands = 0 : i64, tpu.core_type = #tpu.core_type<tc>, window_params = [{transform_indices = @transform_0, window_bounds = array<i64: 1, 16, 144>}, {pipeline_mode = #tpu.pipeline_mode<synchronous>, transform_indices = @transform_1, window_bounds = array<i64: 144, 128>}, {pipeline_mode = #tpu.pipeline_mode<synchronous>, transform_indices = @transform_2, window_bounds = array<i64: 1, 128>}, {transform_indices = @transform_3, window_bounds = array<i64: 1, 16, 128>}]} {
    %c0 = arith.constant 0 : index
    %c0_0 = arith.constant 0 : index
    %c0_1 = arith.constant 0 : index
    %0 = vector.load %arg1[%c0, %c0_0, %c0_1] : memref<1x16x144xf32, #tpu.memory_space<vmem>>, vector<1x16x144xf32>
    %1 = vector.shape_cast %0 : vector<1x16x144xf32> to vector<16x144xf32>
    %2 = arith.truncf %1 : vector<16x144xf32> to vector<16x144xbf16>
    %c0_2 = arith.constant 0 : index
    %c0_3 = arith.constant 0 : index
    %3 = vector.load %arg2[%c0_2, %c0_3] : memref<144x128xbf16, #tpu.memory_space<vmem>>, vector<144x128xbf16>
    %cst = arith.constant dense<0.000000e+00> : vector<16x128xf32>
    %4 = tpu.matmul %2, %3, %cst {dimension_numbers = #tpu.dot_dimension_numbers<[1], [0], [0], [1], [0, 0, 1, 1], [], []>} : vector<16x144xbf16>, vector<144x128xbf16>, vector<16x128xf32> -> vector<16x128xf32>
    %c0_4 = arith.constant 0 : index
    %c0_5 = arith.constant 0 : index
    %5 = vector.load %arg3[%c0_4, %c0_5] : memref<1x128xf32, #tpu.memory_space<vmem>>, vector<1x128xf32>
    %6 = vector.broadcast %5 : vector<1x128xf32> to vector<16x128xf32>
    %7 = arith.addf %4, %6 : vector<16x128xf32>
    %c0_6 = arith.constant 0 : index
    %c0_7 = arith.constant 0 : index
    %c0_8 = arith.constant 0 : index
    %8 = vector.load %arg4[%c0_6, %c0_7, %c0_8] : memref<1x16x128xf32, #tpu.memory_space<vmem>>, vector<1x16x128xf32>
    %9 = vector.shape_cast %8 : vector<1x16x128xf32> to vector<16x128xf32>
    %10 = vector.shape_cast %7 : vector<16x128xf32> to vector<1x16x128xf32>
    tpu.vector_store %arg4[%c0_6, %c0_7, %c0_8], %10 {strides = array<i32>} : memref<1x16x128xf32, #tpu.memory_space<vmem>>, vector<1x16x128xf32>,
    return
  }
  func.func @transform_0(%arg0: i32) -> (i32, i32, i32) {
    %c0_i32 = arith.constant 0 : i32
    %c0_i32_0 = arith.constant 0 : i32
    %c0_i32_1 = arith.constant 0 : i32
    return %arg0, %c0_i32, %c0_i32_0 : i32, i32, i32
  }
  func.func @transform_1(%arg0: i32) -> (i32, i32) {
    %c0_i32 = arith.constant 0 : i32
    %c0_i32_0 = arith.constant 0 : i32
    %c0_i32_1 = arith.constant 0 : i32
    return %c0_i32, %c0_i32_0 : i32, i32
  }
  func.func @transform_2(%arg0: i32) -> (i32, i32) {
    %c0_i32 = arith.constant 0 : i32
    %c0_i32_0 = arith.constant 0 : i32
    %c0_i32_1 = arith.constant 0 : i32
    return %c0_i32, %c0_i32_0 : i32, i32
  }
  func.func @transform_3(%arg0: i32) -> (i32, i32, i32) {
    %c0_i32 = arith.constant 0 : i32
    %c0_i32_0 = arith.constant 0 : i32
    %c0_i32_1 = arith.constant 0 : i32
    return %arg0, %c0_i32, %c0_i32_0 : i32, i32, i32
  }
}

module attributes {stable_mosaic.version = 11 : i64} {
  func.func @_linear_kernel(%arg0: i32, %arg1: memref<1x16x128xf32, #tpu.memory_space<vmem>>, %arg2: memref<128x128xbf16, #tpu.memory_space<vmem>>, %arg3: memref<1x128xf32, #tpu.memory_space<vmem>>, %arg4: memref<1x16x128xf32, #tpu.memory_space<vmem>>) attributes {dimension_semantics = [#tpu.dimension_semantics<parallel>], iteration_bounds = array<i64: 2>, scalar_prefetch = 0 : i64, scratch_operands = 0 : i64, tpu.core_type = #tpu.core_type<tc>, window_params = [{transform_indices = @transform_0, window_bounds = array<i64: 1, 16, 128>}, {pipeline_mode = #tpu.pipeline_mode<synchronous>, transform_indices = @transform_1, window_bounds = array<i64: 128, 128>}, {pipeline_mode = #tpu.pipeline_mode<synchronous>, transform_indices = @transform_2, window_bounds = array<i64: 1, 128>}, {transform_indices = @transform_3, window_bounds = array<i64: 1, 16, 128>}]} {
    %c0 = arith.constant 0 : index
    %c0_0 = arith.constant 0 : index
    %c0_1 = arith.constant 0 : index
    %0 = vector.load %arg1[%c0, %c0_0, %c0_1] : memref<1x16x128xf32, #tpu.memory_space<vmem>>, vector<1x16x128xf32>
    %1 = vector.shape_cast %0 : vector<1x16x128xf32> to vector<16x128xf32>
    %2 = arith.truncf %1 : vector<16x128xf32> to vector<16x128xbf16>
    %c0_2 = arith.constant 0 : index
    %c0_3 = arith.constant 0 : index
    %3 = vector.load %arg2[%c0_2, %c0_3] : memref<128x128xbf16, #tpu.memory_space<vmem>>, vector<128x128xbf16>
    %cst = arith.constant dense<0.000000e+00> : vector<16x128xf32>
    %4 = tpu.matmul %2, %3, %cst {dimension_numbers = #tpu.dot_dimension_numbers<[1], [0], [0], [1], [0, 0, 1, 1], [], []>} : vector<16x128xbf16>, vector<128x128xbf16>, vector<16x128xf32> -> vector<16x128xf32>
    %c0_4 = arith.constant 0 : index
    %c0_5 = arith.constant 0 : index
    %5 = vector.load %arg3[%c0_4, %c0_5] : memref<1x128xf32, #tpu.memory_space<vmem>>, vector<1x128xf32>
    %6 = vector.broadcast %5 : vector<1x128xf32> to vector<16x128xf32>
    %7 = arith.addf %4, %6 : vector<16x128xf32>
    %c0_6 = arith.constant 0 : index
    %c0_7 = arith.constant 0 : index
    %c0_8 = arith.constant 0 : index
    %8 = vector.load %arg4[%c0_6, %c0_7, %c0_8] : memref<1x16x128xf32, #tpu.memory_space<vmem>>, vector<1x16x128xf32>
    %9 = vector.shape_cast %8 : vector<1x16x128xf32> to vector<16x128xf32>
    %10 = vector.shape_cast %7 : vector<16x128xf32> to vector<1x16x128xf32>
    tpu.vector_store %arg4[%c0_6, %c0_7, %c0_8], %10 {strides = array<i32>} : memref<1x16x128xf32, #tpu.memory_space<vmem>>, vector<1x16x128xf32>,
    return
  }
  func.func @transform_0(%arg0: i32) -> (i32, i32, i32) {
    %c0_i32 = arith.constant 0 : i32
    %c0_i32_0 = arith.constant 0 : i32
    %c0_i32_1 = arith.constant 0 : i32
    return %arg0, %c0_i32, %c0_i32_0 : i32, i32, i32
  }
  func.func @transform_1(%arg0: i32) -> (i32, i32) {
    %c0_i32 = arith.constant 0 : i32
    %c0_i32_0 = arith.constant 0 : i32
    %c0_i32_1 = arith.constant 0 : i32
    return %c0_i32, %c0_i32_0 : i32, i32
  }
  func.func @transform_2(%arg0: i32) -> (i32, i32) {
    %c0_i32 = arith.constant 0 : i32
    %c0_i32_0 = arith.constant 0 : i32
    %c0_i32_1 = arith.constant 0 : i32
    return %c0_i32, %c0_i32_0 : i32, i32
  }
  func.func @transform_3(%arg0: i32) -> (i32, i32, i32) {
    %c0_i32 = arith.constant 0 : i32
    %c0_i32_0 = arith.constant 0 : i32
    %c0_i32_1 = arith.constant 0 : i32
    return %arg0, %c0_i32, %c0_i32_0 : i32, i32, i32
  }
}

</mosaic_0001>

<bundles_post_ra>
// kernel: flowformer_forward.12
= control target key start
LH: loop header
LB: loop body
LE: loop exit
PB: predicated region body
PF: predicated region fallthrough
CT: control target
= control target key end

     0   :  { %s478_s12 = smov 0   ;;  %s538_s0 = inlined_call_operand.vmem [shape: f32[4,16,192], index: 0, kind: input, shape index: {}]   ;;  %s539_s1 = inlined_call_operand.vmem [shape: bf16[192,128], index: 1, kind: input, shape index: {}]   ;;  %s540_s2 = inlined_call_operand.vmem [shape: f32[1,128], index: 2, kind: input, shape index: {}]   ;;  %s541_s3 = inlined_call_operand.vmem [shape: f32[4,16,128], index: 3, kind: output, shape index: {}]  }
   0x1 LB: > { %s367_s13 = sadd.s32 4294967295, %s456_s12   ;;  %p371_p0 = scmp.ge.s32.totalorder %s456_s12, 1  ;;  %s456_s12 = sphi %s478_s12, %s13_s12  }
   0x2   : > { %p137_p1 = scmp.lt.s32.totalorder %s456_s12, 5 }
   0x4   : > { %p138_p2 = pnand %p371_p0, %p137_p1 }
   0x5   : > { %p161_p3 = scmp.lt.s32.totalorder (!%p138_p2), %s367_s13, 3 }
   0x6   : > { %141 = sbr.rel (%p138_p2) target bundleno = 182 (0xb6), region = 32 }
   0xb   : > { %v436_v0 = vld [vmem:[%s539_s1 + $0x38] sm:$0xff]  ;;  %v435_v2 = vld [vmem:[%s539_s1 + $0x30] sm:$0xff]  ;;  %s543_s13 = smov (!%p161_p3, %s367_s13), 3  ;;  %v434_v4 = vld [vmem:[%s539_s1 + $0x28] sm:$0xff]  ;;  %vm278_vm0 = vcmask 523264  }
   0xc   : > { %v440_v1 = vld [vmem:[%s539_s1 + $0x58] sm:$0xff]  ;;  %282 = vmatpush.bf16.msra.mxu0 %v436_v0  ;;  %v439_v3 = vld [vmem:[%s539_s1 + $0x50] sm:$0xff]  ;;  %s427_s22 = sshll.u32 %s543_s13, 5  ;;  %v438_v5 = vld [vmem:[%s539_s1 + $0x48] sm:$0xff]  ;;  %s428_s19 = sshll.u32 %s543_s13, 4 }
   0xd   : > { %300 = vmatpush.bf16.msra.mxu1 %v440_v1  ;;  %s165_s29 = scalar_lea.vmem %s538_s0, %s427_s22  ;;  %v433_v6 = vld [vmem:[%s539_s1 + $0x20] sm:$0xff]  ;;  %v432_v10 = vld [vmem:[%s539_s1 + $0x18] sm:$0xff]  ;;  %v431_v12 = vld [vmem:[%s539_s1 + $0x10] sm:$0xff]  ;;  %s170_s22 = scalar_lea.vmem %s541_s3, %s428_s19 }
   0xe   : > { %v437_v7 = vld [vmem:[%s539_s1 + $0x40] sm:$0xff]  ;;  %v173_v8 = vld [vmem:[%s165_s29 + $0x8] sm:$0xff]  ;;  %v175_v9 = vld [vmem:[%s165_s29 + $0x18] sm:$0xff] }
   0xf   : > { %v177_v11 = vpack.c.bf16 %v175_v9, %v173_v8  ;;  %v430_v13 = vld [vmem:[%s539_s1 + $0x8] sm:$0xff]  ;;  %v429_v14 = vld [vmem:[%s539_s1] sm:$0xff]  ;;  %v174_v16 = vld [vmem:[%s165_s29 + $0x10] sm:$0xff] }
  0x10   : > { %283 = vmatpush.bf16.msra.mxu0 %v435_v2  ;;  %v172_v15 = vld [vmem:[%s165_s29] sm:$0xff] }
  0x11   : > { %301 = vmatpush.bf16.msra.mxu1 %v439_v3  ;;  %v176_v17 = vpack.c.bf16 %v174_v16, %v172_v15  ;;  %v449_v18 = vld [vmem:[%s540_s2] ss:$0 sm:$0xff] }
  0x14   : > { %284 = vmatpush.bf16.msra.mxu0 %v434_v4 }
  0x15   : > { %302 = vmatpush.bf16.msra.mxu1 %v438_v5 }
  0x18   : > { %285 = vmatpush.bf16.msra.mxu0 %v433_v6 }
  0x19   : > { %303 = vmatpush.bf16.msra.mxu1 %v437_v7 }
  0x1c   : > { %286 = vmatpush.bf16.msra.mxu0 %v432_v10  ;;  %424 = vmatmul.msk.bf16.vlgmr.msra.gmra.mxu1 %vm278_vm0, %v177_v11 }
  0x20   : > { %287 = vmatpush.bf16.msra.mxu0 %v431_v12 }
  0x24   : > { %288 = vmatpush.bf16.msra.mxu0 %v430_v13 }
  0x28   : > { %289 = vmatpush.bf16.msra.mxu0 %v429_v14 }
  0x2b   : > { %290 = vmatmul.bf16.vlgmr.msra.gmra.mxu0 %v176_v17 }
  0x99   : > { %v305_v19 = vpop.f32.mrf.mxu1 }
  0xa1   : > { %v307_v25 = vpop.f32.mrf.mxu1 }
  0xa8   : > { %v291_v20 = vpop.f32.mrf.mxu0 }
  0xa9   : > { %v292_v21 = vadd.f32 %v449_v18, %v291_v20 }
  0xab   : > { %v306_v22 = vadd.f32 %v305_v19, %v292_v21 }
  0xad   : > { %310 = vst [vmem:[%s170_s22] sm:$0xff] %v306_v22 }
  0xb0   : > { %v293_v23 = vpop.f32.mrf.mxu0 }
  0xb1   : > { %v294_v24 = vadd.f32 %v449_v18, %v293_v23 }
  0xb3   : > { %v308_v26 = vadd.f32 %v307_v25, %v294_v24 }
  0xb5   : > { %311 = vst [vmem:[%s170_s22 + $0x8] sm:$0xff] %v308_v26 }
  0xb6 PF: > { %s13_s12 = sadd.s32 1, %s456_s12  }
  0xb7   : > { %p10_p4 = scmp.ge.s32.totalorder %s13_s12, 6  }
  0xb9   :  { %12 = sbr.rel (!%p10_p4) target bundleno = 1 (0x1), region = 62 }

// kernel: flowformer_forward.14
= control target key start
LH: loop header
LB: loop body
LE: loop exit
PB: predicated region body
PF: predicated region fallthrough
CT: control target
= control target key end

     0   :  { %s496_s15 = smov 0   ;;  %s535_s0 = inlined_call_operand.vmem [shape: f32[2,16,128], index: 0, kind: input, shape index: {}]   ;;  %s536_s1 = inlined_call_operand.vmem [shape: f32[2,16,128], index: 1, kind: input, shape index: {}]   ;;  %s537_s2 = inlined_call_operand.vmem [shape: bf16[16,128], index: 2, kind: input, shape index: {}]   ;;  %s538_s3 = inlined_call_operand.vmem [shape: f32[1,128], index: 3, kind: input, shape index: {}]   ;;  %s539_s4 = inlined_call_operand.vmem [shape: f32[2,16,128], index: 4, kind: output, shape index: {}]  }
   0x1 LB: > { %s422_s16 = sadd.s32 4294967295, %s469_s15   ;;  %p426_p0 = scmp.ge.s32.totalorder %s469_s15, 1  ;;  %s469_s15 = sphi %s496_s15, %s14_s15  }
   0x2   : > { %p172_p1 = scmp.lt.s32.totalorder %s469_s15, 3 }
   0x4   : > { %p173_p2 = pnand %p426_p0, %p172_p1 }
   0x5   : > { %p203_p3 = scmp.lt.s32.totalorder (!%p173_p2), %s422_s16, 1 }
   0x6   : > { %176 = sbr.rel (%p173_p2) target bundleno = 614 (0x266), region = 36 }
   0xb   : > { %v450_v0 = vld [vmem:[%s537_s2] sm:$0xff]  ;;  %s541_s16 = smov (!%p203_p3, %s422_s16), 1  ;;  %vm246_vm0 = vcmask 130048  }
   0xc   : > { %278 = vmatpush.bf16.msra.mxu0 %v450_v0  ;;  %451 = vmatpush.bf16.msra.mxu2 %v450_v0  ;;  %s507_s19 = sshll.u32 %s541_s16, 4  ;;  %v462_v39 = vld [vmem:[%s538_s3] ss:$0 sm:$0xff] }
   0xd   : > { %452 = vmatpush.bf16.msra.mxu3 %v450_v0  ;;  %s212_s22 = scalar_lea.vmem %s536_s1, %s507_s19  ;;  %s207_s25 = scalar_lea.vmem %s535_s0, %s507_s19 }
   0xe   : > { %v219_v1 = vld [vmem:[%s212_s22] sm:$0xff]  ;;  %v220_v2 = vld [vmem:[%s212_s22 + $0x8] sm:$0xff]  ;;  %s217_s30 = scalar_lea.vmem %s539_s4, %s507_s19 }
   0xf   : > { %v221_v3 = vpack.c.bf16 %v220_v2, %v219_v1  ;;  %v320_v35 = vld [vmem:[%s207_s25] sm:$0xff]  ;;  %v321_v36 = vld [vmem:[%s207_s25 + $0x8] sm:$0xff] }
  0x10   : > { %v322_v38 = vpack.c.bf16 %v321_v36, %v320_v35 }
  0x11   : > { %222 = vxpose.xlu0.c.b16.start.end [1/1] (short) %v221_v3, 128 }
  0xbd   : > { %v230_v4 = vpop.trf.xlu0 }
  0xbe   : > { %437 = vmatmul.msk.bf16.vlgmr.msra.gmra.mxu0 %vm246_vm0, %v230_v4 }
  0xcd   : > { %v231_v5 = vpop.trf.xlu0 }
  0xce   : > { %438 = vmatmul.msk.bf16.gmra.mxu0 %vm246_vm0, %v231_v5 }
  0xdd   : > { %v232_v6 = vpop.trf.xlu0 }
  0xde   : > { %439 = vmatmul.msk.bf16.gmra.mxu0 %vm246_vm0, %v232_v6 }
  0xed   : > { %v233_v7 = vpop.trf.xlu0 }
  0xee   : > { %440 = vmatmul.msk.bf16.vlgmr.msra.gmra.mxu2 %vm246_vm0, %v233_v7 }
  0xfd   : > { %v234_v8 = vpop.trf.xlu0 }
  0xfe   : > { %441 = vmatmul.msk.bf16.gmra.mxu2 %vm246_vm0, %v234_v8 }
 0x10d   : > { %v235_v9 = vpop.trf.xlu0 }
 0x10e   : > { %442 = vmatmul.msk.bf16.gmra.mxu2 %vm246_vm0, %v235_v9 }
 0x11d   : > { %v236_v10 = vpop.trf.xlu0 }
 0x11e   : > { %443 = vmatmul.msk.bf16.vlgmr.msra.gmra.mxu3 %vm246_vm0, %v236_v10 }
 0x12d   : > { %v237_v11 = vpop.trf.xlu0 }
 0x12e   : > { %444 = vmatmul.msk.bf16.gmra.mxu3 %vm246_vm0, %v237_v11 }
 0x13b   : > { %v280_v14 = vpop.f32.mrf.mxu0 }
 0x143   : > { %v282_v17 = vpop.f32.mrf.mxu0 }
 0x144   : > { %v323_v37 = vpack.c.bf16 %v282_v17, %v280_v14 }
 0x14b   : > { %v285_v20 = vpop.f32.mrf.mxu0 }
 0x153   : > { %v287_v23 = vpop.f32.mrf.mxu0 }
 0x154   : > { %v324_v34 = vpack.c.bf16 %v287_v23, %v285_v20 }
 0x15b   : > { %v290_v28 = vpop.f32.mrf.mxu0 }
 0x163   : > { %v292_v32 = vpop.f32.mrf.mxu0 }
 0x164   : > { %v325_v33 = vpack.c.bf16 %v292_v32, %v290_v28 }
 0x171   : > { %v295_v12 = vpop.f32.mrf.mxu2 }
 0x179   : > { %v297_v13 = vpop.f32.mrf.mxu2 }
 0x17a   : > { %v326_v31 = vpack.c.bf16 %v297_v13, %v295_v12 }
 0x181   : > { %v300_v15 = vpop.f32.mrf.mxu2 }
 0x189   : > { %v302_v19 = vpop.f32.mrf.mxu2 }
 0x18a   : > { %v327_v30 = vpack.c.bf16 %v302_v19, %v300_v15 }
 0x191   : > { %v305_v22 = vpop.f32.mrf.mxu2 }
 0x199   : > { %v307_v27 = vpop.f32.mrf.mxu2 }
 0x19a   : > { %v328_v29 = vpack.c.bf16 %v307_v27, %v305_v22 }
 0x1a1   : > { %v310_v16 = vpop.f32.mrf.mxu3 }
 0x1a9   : > { %v312_v18 = vpop.f32.mrf.mxu3 }
 0x1aa   : > { %v329_v26 = vpack.c.bf16 %v312_v18, %v310_v16 }
 0x1b1   : > { %v315_v21 = vpop.f32.mrf.mxu3 }
 0x1b9   : > { %v317_v24 = vpop.f32.mrf.mxu3 }
 0x1ba   : > { %v330_v25 = vpack.c.bf16 %v317_v24, %v315_v21 }
 0x1bc   : > { %331 = vmatpush.bf16.msra.mxu1 %v330_v25 }
 0x1c0   : > { %332 = vmatpush.bf16.msra.mxu1 %v329_v26 }
 0x1c4   : > { %333 = vmatpush.bf16.msra.mxu1 %v328_v29 }
 0x1c8   : > { %334 = vmatpush.bf16.msra.mxu1 %v327_v30 }
 0x1cc   : > { %335 = vmatpush.bf16.msra.mxu1 %v326_v31 }
 0x1d0   : > { %336 = vmatpush.bf16.msra.mxu1 %v325_v33 }
 0x1d4   : > { %337 = vmatpush.bf16.msra.mxu1 %v324_v34 }
 0x1d8   : > { %338 = vmatpush.bf16.msra.mxu1 %v323_v37 }
 0x1db   : > { %339 = vmatmul.bf16.vlgmr.msra.gmra.mxu1 %v322_v38 }
 0x258   : > { %v340_v40 = vpop.f32.mrf.mxu1 }
 0x259   : > { %v345_v41 = vmul.f32 0.088388346, %v340_v40 }
 0x25b   : > { %v351_v42 = vadd.f32 %v462_v39, %v345_v41 }
 0x25d   : > { %353 = vst [vmem:[%s217_s30] sm:$0xff] %v351_v42 }
 0x260   : > { %v342_v43 = vpop.f32.mrf.mxu1 }
 0x261   : > { %v346_v44 = vmul.f32 0.088388346, %v342_v43 }
 0x263   : > { %v352_v45 = vadd.f32 %v462_v39, %v346_v44 }
 0x265   : > { %354 = vst [vmem:[%s217_s30 + $0x8] sm:$0xff] %v352_v45 }
 0x266 PF: > { %s14_s15 = sadd.s32 1, %s469_s15  }
 0x267   : > { %p11_p4 = scmp.ge.s32.totalorder %s14_s15, 4  }
 0x269   :  { %13 = sbr.rel (!%p11_p4) target bundleno = 1 (0x1), region = 69 }

// kernel: flowformer_forward.10
= control target key start
LH: loop header
LB: loop body
LE: loop exit
PB: predicated region body
PF: predicated region fallthrough
CT: control target
= control target key end

     0   :  { %s478_s12 = smov 0   ;;  %s538_s0 = inlined_call_operand.vmem [shape: f32[2,16,192], index: 0, kind: input, shape index: {}]   ;;  %s539_s1 = inlined_call_operand.vmem [shape: bf16[192,128], index: 1, kind: input, shape index: {}]   ;;  %s540_s2 = inlined_call_operand.vmem [shape: f32[1,128], index: 2, kind: input, shape index: {}]   ;;  %s541_s3 = inlined_call_operand.vmem [shape: f32[2,16,128], index: 3, kind: output, shape index: {}]  }
   0x1 LB: > { %s367_s13 = sadd.s32 4294967295, %s456_s12   ;;  %p371_p0 = scmp.ge.s32.totalorder %s456_s12, 1  ;;  %s456_s12 = sphi %s478_s12, %s13_s12  }
   0x2   : > { %p137_p1 = scmp.lt.s32.totalorder %s456_s12, 3 }
   0x4   : > { %p138_p2 = pnand %p371_p0, %p137_p1 }
   0x5   : > { %p161_p3 = scmp.lt.s32.totalorder (!%p138_p2), %s367_s13, 1 }
   0x6   : > { %141 = sbr.rel (%p138_p2) target bundleno = 182 (0xb6), region = 32 }
   0xb   : > { %v436_v0 = vld [vmem:[%s539_s1 + $0x38] sm:$0xff]  ;;  %v435_v2 = vld [vmem:[%s539_s1 + $0x30] sm:$0xff]  ;;  %s543_s13 = smov (!%p161_p3, %s367_s13), 1  ;;  %v434_v4 = vld [vmem:[%s539_s1 + $0x28] sm:$0xff]  ;;  %vm278_vm0 = vcmask 523264  }
   0xc   : > { %v440_v1 = vld [vmem:[%s539_s1 + $0x58] sm:$0xff]  ;;  %282 = vmatpush.bf16.msra.mxu0 %v436_v0  ;;  %v439_v3 = vld [vmem:[%s539_s1 + $0x50] sm:$0xff]  ;;  %s427_s22 = sshll.u32 %s543_s13, 5  ;;  %v438_v5 = vld [vmem:[%s539_s1 + $0x48] sm:$0xff]  ;;  %s428_s19 = sshll.u32 %s543_s13, 4 }
   0xd   : > { %300 = vmatpush.bf16.msra.mxu1 %v440_v1  ;;  %s165_s29 = scalar_lea.vmem %s538_s0, %s427_s22  ;;  %v433_v6 = vld [vmem:[%s539_s1 + $0x20] sm:$0xff]  ;;  %v432_v10 = vld [vmem:[%s539_s1 + $0x18] sm:$0xff]  ;;  %v431_v12 = vld [vmem:[%s539_s1 + $0x10] sm:$0xff]  ;;  %s170_s22 = scalar_lea.vmem %s541_s3, %s428_s19 }
   0xe   : > { %v437_v7 = vld [vmem:[%s539_s1 + $0x40] sm:$0xff]  ;;  %v173_v8 = vld [vmem:[%s165_s29 + $0x8] sm:$0xff]  ;;  %v175_v9 = vld [vmem:[%s165_s29 + $0x18] sm:$0xff] }
   0xf   : > { %v177_v11 = vpack.c.bf16 %v175_v9, %v173_v8  ;;  %v430_v13 = vld [vmem:[%s539_s1 + $0x8] sm:$0xff]  ;;  %v429_v14 = vld [vmem:[%s539_s1] sm:$0xff]  ;;  %v174_v16 = vld [vmem:[%s165_s29 + $0x10] sm:$0xff] }
  0x10   : > { %283 = vmatpush.bf16.msra.mxu0 %v435_v2  ;;  %v172_v15 = vld [vmem:[%s165_s29] sm:$0xff] }
  0x11   : > { %301 = vmatpush.bf16.msra.mxu1 %v439_v3  ;;  %v176_v17 = vpack.c.bf16 %v174_v16, %v172_v15  ;;  %v449_v18 = vld [vmem:[%s540_s2] ss:$0 sm:$0xff] }
  0x14   : > { %284 = vmatpush.bf16.msra.mxu0 %v434_v4 }
  0x15   : > { %302 = vmatpush.bf16.msra.mxu1 %v438_v5 }
  0x18   : > { %285 = vmatpush.bf16.msra.mxu0 %v433_v6 }
  0x19   : > { %303 = vmatpush.bf16.msra.mxu1 %v437_v7 }
  0x1c   : > { %286 = vmatpush.bf16.msra.mxu0 %v432_v10  ;;  %424 = vmatmul.msk.bf16.vlgmr.msra.gmra.mxu1 %vm278_vm0, %v177_v11 }
  0x20   : > { %287 = vmatpush.bf16.msra.mxu0 %v431_v12 }
  0x24   : > { %288 = vmatpush.bf16.msra.mxu0 %v430_v13 }
  0x28   : > { %289 = vmatpush.bf16.msra.mxu0 %v429_v14 }
  0x2b   : > { %290 = vmatmul.bf16.vlgmr.msra.gmra.mxu0 %v176_v17 }
  0x99   : > { %v305_v19 = vpop.f32.mrf.mxu1 }
  0xa1   : > { %v307_v25 = vpop.f32.mrf.mxu1 }
  0xa8   : > { %v291_v20 = vpop.f32.mrf.mxu0 }
  0xa9   : > { %v292_v21 = vadd.f32 %v449_v18, %v291_v20 }
  0xab   : > { %v306_v22 = vadd.f32 %v305_v19, %v292_v21 }
  0xad   : > { %310 = vst [vmem:[%s170_s22] sm:$0xff] %v306_v22 }
  0xb0   : > { %v293_v23 = vpop.f32.mrf.mxu0 }
  0xb1   : > { %v294_v24 = vadd.f32 %v449_v18, %v293_v23 }
  0xb3   : > { %v308_v26 = vadd.f32 %v307_v25, %v294_v24 }
  0xb5   : > { %311 = vst [vmem:[%s170_s22 + $0x8] sm:$0xff] %v308_v26 }
  0xb6 PF: > { %s13_s12 = sadd.s32 1, %s456_s12  }
  0xb7   : > { %p10_p4 = scmp.ge.s32.totalorder %s13_s12, 4  }
  0xb9   :  { %12 = sbr.rel (!%p10_p4) target bundleno = 1 (0x1), region = 62 }

// kernel: flowformer_forward.13
= control target key start
LH: loop header
LB: loop body
LE: loop exit
PB: predicated region body
PF: predicated region fallthrough
CT: control target
= control target key end

     0   :  { %s400_s9 = smov 0   ;;  %s402_s10 = smov 0   ;;  %s433_s0 = inlined_call_operand.vmem [shape: f32[2,16,128], index: 0, kind: input, shape index: {}]   ;;  %s434_s1 = inlined_call_operand.vmem [shape: f32[2,16,128], index: 1, kind: input, shape index: {}]   ;;  %s435_s2 = inlined_call_operand.vmem [shape: f32[2,16,16], index: 2, kind: output, shape index: {}]  }
   0x1   :  { %s404_s11 = smov 0  }
   0x2 LB: > { %s24_s12 = sadd.s32 1, %s379_s10  ;;  %p325_p0 = scmp.ge.s32.totalorder %s383_s11, 1  ;;  %s383_s11 = sphi %s404_s11, %s12_s11   ;;  %s379_s10 = sphi %s402_s10, %s437_s10   ;;  %s375_s9 = sphi %s400_s9, %s436_s9  }
   0x3   : > { %p26_p1 = scmp.ge.s32.totalorder %s24_s12, 2  ;;  %p143_p2 = scmp.lt.s32.totalorder %s383_s11, 3 }
   0x5   : > { %s439_s12 = smov (%p26_p1, %s24_s12), 0  ;;  %p144_p3 = pnand %p325_p0, %p143_p2 }
   0x6   : > { %p177_p4 = scmp.lt.s32.totalorder (!%p144_p3), %s375_s9, 1 }
   0x7   : > { %147 = sbr.rel (%p144_p3) target bundleno = 162 (0xa2), region = 28 }
   0xc   : > { %s441_s9 = smov (!%p177_p4, %s375_s9), 1  ;;  %vm223_vm0 = vcmask 130048  }
   0xd   : > { %s334_s13 = sshll.u32 %s441_s9, 4 }
   0xe   : > { %s190_s16 = scalar_lea.vmem %s434_s1, %s334_s13  ;;  %s181_s19 = scalar_lea.vmem %s433_s0, %s334_s13 }
   0xf   : > { %v204_v0 = vld [vmem:[%s190_s16] sm:$0xff]  ;;  %v205_v1 = vld [vmem:[%s190_s16 + $0x8] sm:$0xff]  ;;  %s199_s22 = scalar_lea.vmem %s435_s2, %s334_s13 }
  0x10   : > { %v206_v2 = vpack.c.bf16 %v205_v1, %v204_v0  ;;  %v201_v3 = vld [vmem:[%s181_s19] sm:$0xff]  ;;  %v202_v4 = vld [vmem:[%s181_s19 + $0x8] sm:$0xff] }
  0x11   : > { %v203_v5 = vpack.c.bf16 %v202_v4, %v201_v3 }
  0x12   : > { %214 = vmatpush.bf16.xpose.msra.mxu0 %v206_v2 }
  0x19   : > { %215 = vmatmul.bf16.vlgmr.msra.gmra.mxu0 %v203_v5 }
  0x96   : > { %v216_v6 = vpop.f32.mrf.mxu0 }
  0x97   : > { %v221_v7 = vmul.f32 0.088388346, %v216_v6 }
  0x99   : > { %224 = vst.msk [vmem:[%s199_s22] sm:$0xff] %vm223_vm0, %v221_v7 }
  0x9e   : > { %v218_v8 = vpop.f32.mrf.mxu0 }
  0x9f   : > { %v222_v9 = vmul.f32 0.088388346, %v218_v8 }
  0xa1   : > { %225 = vst.msk [vmem:[%s199_s22 + $0x8] sm:$0xff] %vm223_vm0, %v222_v9 }
  0xa2 PF: > { %s12_s11 = sadd.s32 1, %s383_s11   ;;  %s436_s9 = smov %s379_s10 }
  0xa3   : > { %p9_p5 = scmp.ge.s32.totalorder %s12_s11, 4   ;;  %s437_s10 = smov %s439_s12 }
  0xa5   :  { %11 = sbr.rel (!%p9_p5) target bundleno = 2 (0x2), region = 61 }

// kernel: flowformer_forward.11
= control target key start
LH: loop header
LB: loop body
LE: loop exit
PB: predicated region body
PF: predicated region fallthrough
CT: control target
= control target key end

     0   :  { %s1143_s18 = smov 0   ;;  %s1145_s19 = smov 0   ;;  %s1353_s0 = inlined_call_operand.vmem [shape: f32[2,16,128], index: 0, kind: input, shape index: {}, may-alias: {0,1}]   ;;  %s1354_s1 = inlined_call_operand.vmem [shape: f32[2,16,128], index: 1, kind: input, shape index: {}, may-alias: {0,1}]   ;;  %s1355_s2 = inlined_call_operand.vmem [shape: bf16[128,128], index: 2, kind: input, shape index: {}]   ;;  %s1356_s3 = inlined_call_operand.vmem [shape: bf16[128,256], index: 3, kind: input, shape index: {}]   ;;  %s1357_s4 = inlined_call_operand.vmem [shape: bf16[128,128], index: 4, kind: input, shape index: {}]   ;;  %s1358_s5 = inlined_call_operand.vmem [shape: f32[2,16,128], index: 5, kind: output, shape index: {}]  }
   0x1   :  { %s1147_s20 = smov 0  }
   0x2 LB: > { %s34_s21 = sadd.s32 1, %s1104_s19  ;;  %p861_p0 = scmp.ge.s32.totalorder %s1108_s20, 1  ;;  %s1108_s20 = sphi %s1147_s20, %s15_s20   ;;  %s1104_s19 = sphi %s1145_s19, %s1360_s19   ;;  %s1100_s18 = sphi %s1143_s18, %s1359_s18  }
   0x3   : > { %p36_p1 = scmp.ge.s32.totalorder %s34_s21, 2  ;;  %p232_p2 = scmp.lt.s32.totalorder %s1108_s20, 3 }
   0x5   : > { %s1362_s21 = smov (%p36_p1, %s34_s21), 0  ;;  %p233_p3 = pnand %p861_p0, %p232_p2 }
   0x6   : > { %p278_p4 = scmp.lt.s32.totalorder (!%p233_p3), %s1100_s18, 1 }
   0x7   : > { %236 = sbr.rel (%p233_p3) target bundleno = 965 (0x3c5), region = 40 }
   0xc   : > { %v1013_v0 = vld [vmem:[%s1355_s2 + $0x38] sm:$0xff]  ;;  %v958_v1 = vld [vmem:[%s1356_s3 + $0x70] sm:$0xf]  ;;  %v950_v4 = vld [vmem:[%s1356_s3 + $0x60] sm:$0xf]  ;;  %s1364_s18 = smov (!%p278_p4, %s1100_s18), 1 }
   0xd   : > { %v1029_v2 = vld [vmem:[%s1356_s3 + $0x74] sm:$0xf0]  ;;  %v1027_v5 = vld [vmem:[%s1356_s3 + $0x64] sm:$0xf0]  ;;  %379 = vmatpush.bf16.msra.mxu0 %v1013_v0  ;;  %v1012_v6 = vld [vmem:[%s1355_s2 + $0x30] sm:$0xff]  ;;  %s1225_s16 = sshll.u32 %s1364_s18, 4 }
   0xe   : > { %v959_v3 = vor.u32 %v1029_v2, %v958_v1  ;;  %v951_v7 = vor.u32 %v1027_v5, %v950_v4  ;;  %v942_v8 = vld [vmem:[%s1356_s3 + $0x50] sm:$0xf]  ;;  %v1025_v9 = vld [vmem:[%s1356_s3 + $0x54] sm:$0xf0]  ;;  %v1011_v10 = vld [vmem:[%s1355_s2 + $0x28] sm:$0xff]  ;;  %s285_s25 = scalar_lea.vmem %s1353_s0, %s1225_s16  ;;  %s295_s6 = scalar_lea.vmem %s1354_s1, %s1225_s16  ;;  %vm399_vm0 = vcmask 7168  }
   0xf   : > { %v943_v11 = vor.u32 %v1025_v9, %v942_v8  ;;  %v934_v12 = vld [vmem:[%s1356_s3 + $0x40] sm:$0xf]  ;;  %v1023_v13 = vld [vmem:[%s1356_s3 + $0x44] sm:$0xf0]  ;;  %v926_v16 = vld [vmem:[%s1356_s3 + $0x30] sm:$0xf]  ;;  %s305_s22 = scalar_lea.vmem %s1358_s5, %s1225_s16 }
  0x10   : > { %505 = vmatpush.bf16.msra.mxu1 %v959_v3  ;;  %v1010_v14 = vld [vmem:[%s1355_s2 + $0x20] sm:$0xff]  ;;  %v935_v15 = vor.u32 %v1023_v13, %v934_v12  ;;  %v1021_v17 = vld [vmem:[%s1356_s3 + $0x34] sm:$0xf0]  ;;  %v1019_v21 = vld [vmem:[%s1356_s3 + $0x24] sm:$0xf0]  ;;  %v1110_v55 = vmov -inf  }
  0x11   : > { %380 = vmatpush.bf16.msra.mxu0 %v1012_v6  ;;  %v1009_v18 = vld [vmem:[%s1355_s2 + $0x18] sm:$0xff]  ;;  %v927_v19 = vor.u32 %v1021_v17, %v926_v16  ;;  %v918_v20 = vld [vmem:[%s1356_s3 + $0x20] sm:$0xf]  ;;  %v1008_v22 = vld [vmem:[%s1355_s2 + $0x10] sm:$0xff]  ;;  %400 = vst.msk [vmem:[#allocation3] sm:$0xff] %vm399_vm0, %v1110_v55  ;;  %vm559_vm1 = vcmask 130048  }
  0x12   : > { %v919_v23 = vor.u32 %v1019_v21, %v918_v20  ;;  %v910_v24 = vld [vmem:[%s1356_s3 + $0x10] sm:$0xf]  ;;  %v1017_v25 = vld [vmem:[%s1356_s3 + $0x14] sm:$0xf0]  ;;  %v1007_v26 = vld [vmem:[%s1355_s2 + $0x8] sm:$0xff]  ;;  %401 = vst.msk [vmem:[#allocation3 + $0x8] sm:$0xff] %vm399_vm0, %v1110_v55 }
  0x13   : > { %v911_v27 = vor.u32 %v1017_v25, %v910_v24  ;;  %v902_v28 = vld [vmem:[%s1356_s3] sm:$0xf]  ;;  %v1015_v29 = vld [vmem:[%s1356_s3 + $0x4] sm:$0xf0]  ;;  %v1028_v47 = vld [vmem:[%s1356_s3 + $0x74] sm:$0xf] }
  0x14   : > { %506 = vmatpush.bf16.msra.mxu1 %v951_v7  ;;  %v1006_v30 = vld [vmem:[%s1355_s2] sm:$0xff]  ;;  %v1249_v32 = vld [vmem:[%s285_s25 + $0x8] sm:$0xff]  ;;  %v903_v33 = vor.u32 %v1015_v29, %v902_v28  ;;  %v960_v48 = vld [vmem:[%s1356_s3 + $0x78] sm:$0xf0]  ;;  %v1111_v12 = vmov 0   ;;  %v1112_v13 = vmov 0.0  }
  0x15   : > { %381 = vmatpush.bf16.msra.mxu0 %v1011_v10  ;;  %v1247_v31 = vld [vmem:[%s285_s25] sm:$0xff]  ;;  %v407_v35 = vld [vmem:[%s295_s6 + $0x8] sm:$0xff]  ;;  %v963_v50 = vor.u32 %v1028_v47, %v960_v48  ;;  %v1024_v53 = vld [vmem:[%s1356_s3 + $0x54] sm:$0xf]  ;;  %1071 = vset.pattern.permute.xlu1 %v1111_v12  ;;  %402 = vst.msk [vmem:[#allocation4] sm:$0xff] %vm399_vm0, %v1112_v13 }
  0x16   : > { %v406_v34 = vld [vmem:[%s295_s6] sm:$0xff]  ;;  %v314_v36 = vpack.c.bf16 %v1249_v32, %v1247_v31  ;;  %v952_v51 = vld [vmem:[%s1356_s3 + $0x68] sm:$0xf0]  ;;  %v944_v54 = vld [vmem:[%s1356_s3 + $0x58] sm:$0xf0]  ;;  %1072 = vset.pattern.permute.xlu0 %v1111_v12  ;;  %1073 = vset.pattern.permute.xlu2 %v1111_v12  ;;  %403 = vst.msk [vmem:[#allocation4 + $0x8] sm:$0xff] %vm399_vm0, %v1112_v13 }
  0x17   : > { %v408_v37 = vpack.c.bf16 %v407_v35, %v406_v34  ;;  %v1026_v49 = vld [vmem:[%s1356_s3 + $0x64] sm:$0xf]  ;;  %519 = vmatpush.bf16.msra.mxu2 %v963_v50  ;;  %v947_v56 = vor.u32 %v1024_v53, %v944_v54  ;;  %v936_v58 = vld [vmem:[%s1356_s3 + $0x48] sm:$0xf0]  ;;  %v1020_v60 = vld [vmem:[%s1356_s3 + $0x34] sm:$0xf] }
  0x18   : > { %507 = vmatpush.bf16.msra.mxu1 %v943_v11  ;;  %v955_v52 = vor.u32 %v1026_v49, %v952_v51  ;;  %v1022_v57 = vld [vmem:[%s1356_s3 + $0x44] sm:$0xf]  ;;  %v928_v61 = vld [vmem:[%s1356_s3 + $0x38] sm:$0xf0]  ;;  %v920_v0 = vld [vmem:[%s1356_s3 + $0x28] sm:$0xf0] }
  0x19   : > { %382 = vmatpush.bf16.msra.mxu0 %v1010_v14  ;;  %v939_v59 = vor.u32 %v1022_v57, %v936_v58  ;;  %v931_v62 = vor.u32 %v1020_v60, %v928_v61  ;;  %v1018_v63 = vld [vmem:[%s1356_s3 + $0x24] sm:$0xf]  ;;  %v1016_v2 = vld [vmem:[%s1356_s3 + $0x14] sm:$0xf]  ;;  %v912_v3 = vld [vmem:[%s1356_s3 + $0x18] sm:$0xf0] }
  0x1a   : > { %v923_v1 = vor.u32 %v1018_v63, %v920_v0  ;;  %v915_v6 = vor.u32 %v1016_v2, %v912_v3  ;;  %v1014_v7 = vld [vmem:[%s1356_s3 + $0x4] sm:$0xf]  ;;  %v904_v8 = vld [vmem:[%s1356_s3 + $0x8] sm:$0xf0]  ;;  %v1038_v54 = vld [vmem:[%s1357_s4 + $0x38] sm:$0xff] }
  0x1b   : > { %520 = vmatpush.bf16.msra.mxu2 %v955_v52  ;;  %v907_v9 = vor.u32 %v1014_v7, %v904_v8  ;;  %v557_v14 = vld [vmem:[#allocation3] sm:$0xff]  ;;  %v1037_v55 = vld [vmem:[%s1357_s4 + $0x30] sm:$0xff]  ;;  %v1035_v57 = vld [vmem:[%s1357_s4 + $0x20] sm:$0xff] }
  0x1c   : > { %508 = vmatpush.bf16.msra.mxu1 %v935_v15  ;;  %v1034_v58 = vld [vmem:[%s1357_s4 + $0x18] sm:$0xff]  ;;  %v1032_v60 = vld [vmem:[%s1357_s4 + $0x8] sm:$0xff]  ;;  %v1031_v61 = vld [vmem:[%s1357_s4] sm:$0xff] }
  0x1d   : > { %383 = vmatpush.bf16.msra.mxu0 %v1009_v18 }
  0x1f   : > { %521 = vmatpush.bf16.msra.mxu2 %v947_v56  ;;  %v1036_v56 = vld [vmem:[%s1357_s4 + $0x28] sm:$0xff] }
  0x20   : > { %509 = vmatpush.bf16.msra.mxu1 %v927_v19  ;;  %v558_v19 = vld [vmem:[#allocation3 + $0x8] sm:$0xff] }
  0x21   : > { %384 = vmatpush.bf16.msra.mxu0 %v1008_v22 }
  0x23   : > { %522 = vmatpush.bf16.msra.mxu2 %v939_v59  ;;  %v1033_v59 = vld [vmem:[%s1357_s4 + $0x10] sm:$0xff] }
  0x24   : > { %510 = vmatpush.bf16.msra.mxu1 %v919_v23 }
  0x25   : > { %385 = vmatpush.bf16.msra.mxu0 %v1007_v26 }
  0x27   : > { %523 = vmatpush.bf16.msra.mxu2 %v931_v62 }
  0x28   : > { %511 = vmatpush.bf16.msra.mxu1 %v911_v27 }
  0x29   : > { %386 = vmatpush.bf16.msra.mxu0 %v1006_v30 }
  0x2b   : > { %524 = vmatpush.bf16.msra.mxu2 %v923_v1 }
  0x2c   : > { %512 = vmatpush.bf16.msra.mxu1 %v903_v33  ;;  %387 = vmatmul.bf16.vlgmr.msra.gmra.mxu0 %v314_v36 }
  0x2f   : > { %513 = vmatmul.bf16.vlgmr.msra.gmra.mxu1 %v408_v37  ;;  %525 = vmatpush.bf16.msra.mxu2 %v915_v6 }
  0x33   : > { %526 = vmatpush.bf16.msra.mxu2 %v907_v9 }
  0x36   : > { %527 = vmatmul.bf16.vlgmr.msra.gmra.mxu2 %v408_v37 }
  0xa9   : > { %v388_v38 = vpop.f32.mrf.mxu0 }
  0xaa   : > { %v393_v41 = vmul.f32 0.088388346, %v388_v38 }
  0xac   : > { %v514_v39 = vpop.f32.mrf.mxu1 }
  0xb1   : > { %v390_v40 = vpop.f32.mrf.mxu0 }
  0xb2   : > { %v394_v42 = vmul.f32 0.088388346, %v390_v40 }
  0xb4   : > { %v516_v43 = vpop.f32.mrf.mxu1  ;;  %v1042_v45 = vpack.c.bf16 %v394_v42, %v393_v41  ;;  %v590_v42 = vld [vmem:[#allocation4] sm:$0xff] }
  0xb5   : > { %v533_v44 = vpack.c.bf16 %v516_v43, %v514_v39 }
  0xb6   : > { %1043 = vst [vmem:[#allocation2] sm:$0xff] %v1042_v45  }
  0xb7   : > { %550 = vmatpush.bf16.xpose.msrb.mxu0 %v533_v44 }
  0xb9   : > { %v528_v26 = vpop.f32.mrf.mxu2 }
  0xbd   : > { %v1030_v46 = vld [vmem:[#allocation2] sm:$0xff] }
  0xbe   : > { %551 = vmatmul.bf16.vlgmr.msrb.gmra.mxu0 %v1030_v46  ;;  %v591_v46 = vld [vmem:[#allocation4 + $0x8] sm:$0xff] }
  0xc1   : > { %v530_v27 = vpop.f32.mrf.mxu2 }
  0xc2   : > { %v534_v28 = vpack.c.bf16 %v530_v27, %v528_v26 }
  0xc4   : > { %630 = vmatpush.bf16.msra.mxu3 %v534_v28 }
  0xc8   : > { %731 = vmatpush.bf16.msrb.mxu3 %v1038_v54 }
  0xcc   : > { %732 = vmatpush.bf16.msrb.mxu3 %v1037_v55 }
  0xd0   : > { %733 = vmatpush.bf16.msrb.mxu3 %v1036_v56 }
  0xd4   : > { %734 = vmatpush.bf16.msrb.mxu3 %v1035_v57 }
  0xd8   : > { %735 = vmatpush.bf16.msrb.mxu3 %v1034_v58 }
  0xdc   : > { %736 = vmatpush.bf16.msrb.mxu3 %v1033_v59 }
  0xe0   : > { %737 = vmatpush.bf16.msrb.mxu3 %v1032_v60 }
  0xe4   : > { %738 = vmatpush.bf16.msrb.mxu3 %v1031_v61 }
 0x13b   : > { %v552_v4 = vpop.f32.mrf.mxu0 }
 0x13c   : > { %v560_v5 = vsel %vm559_vm1, %v552_v4, -inf }
 0x13d   : > { %561 = vmax.xlane.f32.xlu0 %v560_v5 }
 0x143   : > { %v554_v10 = vpop.f32.mrf.mxu0 }
 0x144   : > { %v563_v11 = vsel %vm559_vm1, %v554_v10, -inf }
 0x145   : > { %564 = vmax.xlane.f32.xlu0 %v563_v11 }
 0x1b0   : > { %v562_v15 = vpop.xlane.xlu0 %561 }
 0x1b1   : > { %v566_v16 = vmax.f32 %v557_v14, %v562_v15 }
 0x1b3   : > { %v568_v17 = vsub.f32 %v557_v14, %v566_v16  ;;  %641 = vst.msk [vmem:[#allocation3] sm:$0xff] %vm399_vm0, %v566_v16  ;;  %576 = vperm.xlu1 %1071, %v566_v16  }
 0x1b5   : > { %v570_v18 = vmul.f32 1.442695, %v568_v17 }
 0x1b7   : > { %1074 = vpow2.f32 %v570_v18 }
 0x1b8   : > { %v565_v20 = vpop.xlane.xlu0 %564 }
 0x1b9   : > { %v567_v21 = vmax.f32 %v558_v19, %v565_v20 }
 0x1bb   : > { %v569_v22 = vsub.f32 %v558_v19, %v567_v21  ;;  %642 = vst.msk [vmem:[#allocation3 + $0x8] sm:$0xff] %vm399_vm0, %v567_v21  ;;  %581 = vperm.xlu1 %1071, %v567_v21  }
 0x1bd   : > { %v1075_v23 = vpop.eup %1074  ;;  %v572_v24 = vmul.f32 1.442695, %v569_v22 }
 0x1be   : > { %609 = vperm.xlu0 %1072, %v1075_v23   ;;  %v592_v43 = vmul.f32 %v1075_v23, %v590_v42 }
 0x1bf   : > { %1076 = vpow2.f32 %v572_v24 }
 0x1c5   : > { %v1077_v25 = vpop.eup %1076 }
 0x1c6   : > { %614 = vperm.xlu1 %1071, %v1077_v25   ;;  %v593_v47 = vmul.f32 %v1077_v25, %v591_v46 }
 0x225   : > { %v577_v29 = vpop.permute.xlu1 %576 }
 0x226   : > { %v584_v30 = vsub.f32 %v552_v4, %v577_v29 }
 0x228   : > { %v586_v33 = vmul.f32 1.442695, %v584_v30 }
 0x22a   : > { %1078 = vpow2.f32 %v586_v33 }
 0x22d   : > { %v582_v34 = vpop.permute.xlu1 %581 }
 0x22e   : > { %v585_v35 = vsub.f32 %v554_v10, %v582_v34 }
 0x230   : > { %v1079_v36 = vpop.eup %1078  ;;  %v588_v37 = vmul.f32 1.442695, %v585_v35  ;;  %v610_v0 = vpop.permute.xlu0 %609 }
 0x231   : > { %v594_v38 = vsel %vm559_vm1, %v1079_v36, 0.0  ;;  %v617_v2 = vmul.f32 0.0, %v610_v0 }
 0x232   : > { %1080 = vpow2.f32 %v588_v37  ;;  %595 = vadd.xlane.f32.xlu2 %v594_v38 }
 0x238   : > { %v1081_v39 = vpop.eup %1080  ;;  %v615_v63 = vpop.permute.xlu1 %614 }
 0x239   : > { %v597_v40 = vsel %vm559_vm1, %v1081_v39, 0.0  ;;  %v619_v41 = vpack.c.bf16 %v1081_v39, %v1079_v36  ;;  %v618_v3 = vmul.f32 0.0, %v615_v63 }
 0x23a   : > { %598 = vadd.xlane.f32.xlu2 %v597_v40 }
 0x23b   : > { %968 = vmatmul.msk.bf16.vlgmr.msra.gmra.mxu3 %vm559_vm1, %v619_v41 }
 0x2a5   : > { %v596_v44 = vpop.xlane.xlu2 %595 }
 0x2a6   : > { %v600_v45 = vadd.f32 %v596_v44, %v592_v43 }
 0x2a8   : > { %603 = vst.msk [vmem:[#allocation4] sm:$0xff] %vm399_vm0, %v600_v45 }
 0x2ad   : > { %v599_v48 = vpop.xlane.xlu2 %598 }
 0x2ae   : > { %v601_v49 = vadd.f32 %v599_v48, %v593_v47 }
 0x2af   : > { %v646_v50 = vld [vmem:[#allocation4] sm:$0xff] }
 0x2b0   : > { %604 = vst.msk [vmem:[#allocation4 + $0x8] sm:$0xff] %vm399_vm0, %v601_v49  ;;  %1082 = vrcp.f32 %v646_v50 }
 0x2b6   : > { %v1083_v51 = vpop.eup %1082 }
 0x2b7   : > { %654 = vperm.xlu2 %1073, %v1083_v51   ;;  %v647_v52 = vld [vmem:[#allocation4 + $0x8] sm:$0xff] }
 0x2b8   : > { %1084 = vrcp.f32 %v647_v52 }
 0x2be   : > { %v1085_v53 = vpop.eup %1084  ;;  %v632_v62 = vpop.f32.mrf.mxu3 }
 0x2bf   : > { %659 = vperm.xlu1 %1071, %v1085_v53   ;;  %v637_v5 = vadd.f32 %v632_v62, %v617_v2 }
 0x2c6   : > { %v634_v1 = vpop.f32.mrf.mxu3 }
 0x2c7   : > { %v638_v6 = vadd.f32 %v634_v1, %v618_v3 }
 0x311   : > { %v655_v4 = vpop.permute.xlu2 %654 }
 0x312   : > { %v662_v8 = vmul.f32 %v655_v4, %v637_v5 }
 0x331   : > { %v660_v7 = vpop.permute.xlu1 %659 }
 0x332   : > { %v663_v9 = vmul.f32 %v660_v7, %v638_v6 }
 0x334   : > { %v664_v10 = vpack.c.bf16 %v663_v9, %v662_v8 }
 0x336   : > { %739 = vmatmul.bf16.vlgmr.msrb.gmra.mxu3 %v664_v10 }
 0x3b9   : > { %v740_v11 = vpop.f32.mrf.mxu3 }
 0x3ba   : > { %v745_v12 = vadd.f32 %v740_v11, %v1247_v31 }
 0x3bc   : > { %747 = vst [vmem:[%s305_s22] sm:$0xff] %v745_v12 }
 0x3c1   : > { %v742_v13 = vpop.f32.mrf.mxu3 }
 0x3c2   : > { %v746_v14 = vadd.f32 %v742_v13, %v1249_v32 }
 0x3c4   : > { %748 = vst [vmem:[%s305_s22 + $0x8] sm:$0xff] %v746_v14 }
 0x3c5 PF: > { %s15_s20 = sadd.s32 1, %s1108_s20   ;;  %s1359_s18 = smov %s1104_s19 }
 0x3c6   : > { %p12_p5 = scmp.ge.s32.totalorder %s15_s20, 4   ;;  %s1360_s19 = smov %s1362_s21 }
 0x3c8   :  { %14 = sbr.rel (!%p12_p5) target bundleno = 2 (0x2), region = 81 }

// kernel: flowformer_forward.17
= control target key start
LH: loop header
LB: loop body
LE: loop exit
PB: predicated region body
PF: predicated region fallthrough
CT: control target
= control target key end

     0   :  { %s439_s12 = smov 0   ;;  %s490_s0 = inlined_call_operand.vmem [shape: f32[2,16,144], index: 0, kind: input, shape index: {}]   ;;  %s491_s1 = inlined_call_operand.vmem [shape: bf16[144,128], index: 1, kind: input, shape index: {}]   ;;  %s492_s2 = inlined_call_operand.vmem [shape: f32[1,128], index: 2, kind: input, shape index: {}]   ;;  %s493_s3 = inlined_call_operand.vmem [shape: f32[2,16,128], index: 3, kind: output, shape index: {}]  }
   0x1 LB: > { %s343_s13 = sadd.s32 4294967295, %s417_s12   ;;  %p347_p0 = scmp.ge.s32.totalorder %s417_s12, 1  ;;  %s417_s12 = sphi %s439_s12, %s13_s12  }
   0x2   : > { %p137_p1 = scmp.lt.s32.totalorder %s417_s12, 3 }
   0x4   : > { %p138_p2 = pnand %p347_p0, %p137_p1 }
   0x5   : > { %p161_p3 = scmp.lt.s32.totalorder (!%p138_p2), %s343_s13, 1 }
   0x6   : > { %141 = sbr.rel (%p138_p2) target bundleno = 182 (0xb6), region = 32 }
   0xb   : > { %v400_v0 = vld [vmem:[%s491_s1 + $0x38] sm:$0xff]  ;;  %v399_v1 = vld [vmem:[%s491_s1 + $0x30] sm:$0xff]  ;;  %v401_v2 = vld [vmem:[%s491_s1 + $0x40] sm:$0xff]  ;;  %s495_s13 = smov (!%p161_p3, %s343_s13), 1  ;;  %vm254_vm0 = vcmask 130048  }
   0xc   : > { %258 = vmatpush.bf16.msra.mxu0 %v400_v0  ;;  %279 = vmatpush.bf16.msra.mxu1 %v401_v2  ;;  %s391_s20 = sshll.u32 %s495_s13, 5  ;;  %v398_v3 = vld [vmem:[%s491_s1 + $0x28] sm:$0xff]  ;;  %v397_v7 = vld [vmem:[%s491_s1 + $0x20] sm:$0xff]  ;;  %v396_v8 = vld [vmem:[%s491_s1 + $0x18] sm:$0xff]  ;;  %s392_s11 = sshll.u32 %s495_s13, 4 }
   0xd   : > { %s165_s23 = scalar_lea.vmem %s490_s0, %s391_s20  ;;  %v395_v9 = vld [vmem:[%s491_s1 + $0x10] sm:$0xff]  ;;  %v394_v10 = vld [vmem:[%s491_s1 + $0x8] sm:$0xff]  ;;  %v393_v11 = vld [vmem:[%s491_s1] sm:$0xff]  ;;  %s170_s16 = scalar_lea.vmem %s493_s3, %s392_s11 }
   0xe   : > { %v173_v4 = vld [vmem:[%s165_s23 + $0x8] sm:$0xff]  ;;  %v175_v5 = vld [vmem:[%s165_s23 + $0x18] sm:$0xff]  ;;  %v172_v12 = vld [vmem:[%s165_s23] sm:$0xff] }
   0xf   : > { %v177_v6 = vpack.c.bf16 %v175_v5, %v173_v4  ;;  %v174_v13 = vld [vmem:[%s165_s23 + $0x10] sm:$0xff]  ;;  %v410_v15 = vld [vmem:[%s492_s2] ss:$0 sm:$0xff] }
  0x10   : > { %259 = vmatpush.bf16.msra.mxu0 %v399_v1  ;;  %v176_v14 = vpack.c.bf16 %v174_v13, %v172_v12 }
  0x11   : > { %388 = vmatmul.msk.bf16.vlgmr.msra.gmra.mxu1 %vm254_vm0, %v177_v6 }
  0x14   : > { %260 = vmatpush.bf16.msra.mxu0 %v398_v3 }
  0x18   : > { %261 = vmatpush.bf16.msra.mxu0 %v397_v7 }
  0x1c   : > { %262 = vmatpush.bf16.msra.mxu0 %v396_v8 }
  0x20   : > { %263 = vmatpush.bf16.msra.mxu0 %v395_v9 }
  0x24   : > { %264 = vmatpush.bf16.msra.mxu0 %v394_v10 }
  0x28   : > { %265 = vmatpush.bf16.msra.mxu0 %v393_v11 }
  0x2b   : > { %266 = vmatmul.bf16.vlgmr.msra.gmra.mxu0 %v176_v14 }
  0x8e   : > { %v281_v16 = vpop.f32.mrf.mxu1 }
  0x96   : > { %v283_v22 = vpop.f32.mrf.mxu1 }
  0xa8   : > { %v267_v17 = vpop.f32.mrf.mxu0 }
  0xa9   : > { %v268_v18 = vadd.f32 %v410_v15, %v267_v17 }
  0xab   : > { %v282_v19 = vadd.f32 %v281_v16, %v268_v18 }
  0xad   : > { %286 = vst [vmem:[%s170_s16] sm:$0xff] %v282_v19 }
  0xb0   : > { %v269_v20 = vpop.f32.mrf.mxu0 }
  0xb1   : > { %v270_v21 = vadd.f32 %v410_v15, %v269_v20 }
  0xb3   : > { %v284_v23 = vadd.f32 %v283_v22, %v270_v21 }
  0xb5   : > { %287 = vst [vmem:[%s170_s16 + $0x8] sm:$0xff] %v284_v23 }
  0xb6 PF: > { %s13_s12 = sadd.s32 1, %s417_s12  }
  0xb7   : > { %p10_p4 = scmp.ge.s32.totalorder %s13_s12, 4  }
  0xb9   :  { %12 = sbr.rel (!%p10_p4) target bundleno = 1 (0x1), region = 62 }

// kernel: flowformer_forward.19
= control target key start
LH: loop header
LB: loop body
LE: loop exit
PB: predicated region body
PF: predicated region fallthrough
CT: control target
= control target key end

     0   :  { %s403_s12 = smov 0   ;;  %s447_s0 = inlined_call_operand.vmem [shape: f32[2,16,128], index: 0, kind: input, shape index: {}]   ;;  %s448_s1 = inlined_call_operand.vmem [shape: bf16[128,128], index: 1, kind: input, shape index: {}]   ;;  %s449_s2 = inlined_call_operand.vmem [shape: f32[1,128], index: 2, kind: input, shape index: {}]   ;;  %s450_s3 = inlined_call_operand.vmem [shape: f32[2,16,128], index: 3, kind: output, shape index: {}]  }
   0x1 LB: > { %s313_s13 = sadd.s32 4294967295, %s381_s12   ;;  %p317_p0 = scmp.ge.s32.totalorder %s381_s12, 1  ;;  %s381_s12 = sphi %s403_s12, %s13_s12  }
   0x2   : > { %p137_p1 = scmp.lt.s32.totalorder %s381_s12, 3 }
   0x4   : > { %p138_p2 = pnand %p317_p0, %p137_p1 }
   0x5   : > { %p161_p3 = scmp.lt.s32.totalorder (!%p138_p2), %s313_s13, 1 }
   0x6   : > { %141 = sbr.rel (%p138_p2) target bundleno = 180 (0xb4), region = 32 }
   0xb   : > { %v365_v0 = vld [vmem:[%s448_s1 + $0x38] sm:$0xff]  ;;  %v364_v1 = vld [vmem:[%s448_s1 + $0x30] sm:$0xff]  ;;  %v363_v2 = vld [vmem:[%s448_s1 + $0x28] sm:$0xff]  ;;  %s452_s13 = smov (!%p161_p3, %s313_s13), 1 }
   0xc   : > { %242 = vmatpush.bf16.msra.mxu0 %v365_v0  ;;  %v362_v3 = vld [vmem:[%s448_s1 + $0x20] sm:$0xff]  ;;  %v361_v4 = vld [vmem:[%s448_s1 + $0x18] sm:$0xff]  ;;  %v360_v5 = vld [vmem:[%s448_s1 + $0x10] sm:$0xff]  ;;  %s356_s26 = sshll.u32 %s452_s13, 4 }
   0xd   : > { %v359_v6 = vld [vmem:[%s448_s1 + $0x8] sm:$0xff]  ;;  %s165_s4 = scalar_lea.vmem %s447_s0, %s356_s26  ;;  %v358_v7 = vld [vmem:[%s448_s1] sm:$0xff]  ;;  %s170_s11 = scalar_lea.vmem %s450_s3, %s356_s26 }
   0xe   : > { %v171_v8 = vld [vmem:[%s165_s4] sm:$0xff]  ;;  %v172_v9 = vld [vmem:[%s165_s4 + $0x8] sm:$0xff] }
   0xf   : > { %v173_v10 = vpack.c.bf16 %v172_v9, %v171_v8  ;;  %v374_v11 = vld [vmem:[%s449_s2] ss:$0 sm:$0xff] }
  0x10   : > { %243 = vmatpush.bf16.msra.mxu0 %v364_v1 }
  0x14   : > { %244 = vmatpush.bf16.msra.mxu0 %v363_v2 }
  0x18   : > { %245 = vmatpush.bf16.msra.mxu0 %v362_v3 }
  0x1c   : > { %246 = vmatpush.bf16.msra.mxu0 %v361_v4 }
  0x20   : > { %247 = vmatpush.bf16.msra.mxu0 %v360_v5 }
  0x24   : > { %248 = vmatpush.bf16.msra.mxu0 %v359_v6 }
  0x28   : > { %249 = vmatpush.bf16.msra.mxu0 %v358_v7 }
  0x2b   : > { %250 = vmatmul.bf16.vlgmr.msra.gmra.mxu0 %v173_v10 }
  0xa8   : > { %v251_v12 = vpop.f32.mrf.mxu0 }
  0xa9   : > { %v252_v13 = vadd.f32 %v374_v11, %v251_v12 }
  0xab   : > { %256 = vst [vmem:[%s170_s11] sm:$0xff] %v252_v13 }
  0xb0   : > { %v253_v14 = vpop.f32.mrf.mxu0 }
  0xb1   : > { %v254_v15 = vadd.f32 %v374_v11, %v253_v14 }
  0xb3   : > { %257 = vst [vmem:[%s170_s11 + $0x8] sm:$0xff] %v254_v15 }
  0xb4 PF: > { %s13_s12 = sadd.s32 1, %s381_s12  }
  0xb5   : > { %p10_p4 = scmp.ge.s32.totalorder %s13_s12, 4  }
  0xb7   :  { %12 = sbr.rel (!%p10_p4) target bundleno = 1 (0x1), region = 62 }

</bundles_post_ra>
